<compile_context>
chip_gen: v7x
topology: tpu7x:2x2x1
jax: 0.10.0
libtpu: 0.0.40
codegen_flags: <defaults>
</compile_context>

<pallas_src>
import jax
import jax.numpy as jnp
from jax import lax
from jax.experimental import pallas as pl
from jax.experimental.pallas import tpu as pltpu

# Small, self-consistent hyperparameters for the synthetic test
# (the PyTorch module uses n_embed=512, block_size=256; same math, smaller
#  dims that stay (8,128)-tile friendly).
N_EMBED = 128     # C  (lane-aligned: exactly one 128-lane vreg row)
HEAD_SIZE = 64    # H
SEQ_LEN = 64      # T (multiple of 8 -> sublane aligned)
BATCH = 8         # B


def _head_kernel(x_ref, wqkv_ref, o_ref):
    # x_ref:    (G, T, C)  bf16 — G batch elements per grid step
    # wqkv_ref: (C, 3H)    bf16 — fused, pre-transposed [q|k|v] weight slab
    # o_ref:    (G, T, H)  output dtype (f32)
    G, T, C = x_ref.shape
    H = o_ref.shape[-1]

    # ---- fused QKV projection: one MXU pass over all G*T rows --------------
    # Collapsing the leading (G, T) dims is layout-free (last dim untouched).
    x2 = x_ref[...].reshape(G * T, C)                                  # bf16
    qkv = jnp.dot(x2, wqkv_ref[...],
                  preferred_element_type=jnp.float32)                  # (G*T, 3H) f32
    qkv = qkv.reshape(G, T, 3 * H)

    # Scale q (G*T*H elements) instead of the (G,T,T) score matrix.
    scale = jnp.float32(C) ** jnp.float32(-0.5)
    q = (qkv[:, :, 0 * H:1 * H] * scale).astype(jnp.bfloat16)
    k = qkv[:, :, 1 * H:2 * H].astype(jnp.bfloat16)
    v = qkv[:, :, 2 * H:3 * H].astype(jnp.bfloat16)

    # ---- attention scores: contract last dims, no in-kernel transpose ------
    wei = jnp.einsum('gqh,gkh->gqk', q, k,
                     preferred_element_type=jnp.float32)               # (G, T, T) f32

    # Causal mask built once per grid step, broadcast across the G sequences.
    row = lax.broadcasted_iota(jnp.int32, (T, T), 0)
    col = lax.broadcasted_iota(jnp.int32, (T, T), 1)
    wei = jnp.where((col <= row)[None, :, :], wei, jnp.float32(-jnp.inf))

    # Numerically stable softmax in f32; reciprocal runs on the EUP slot.
    m = jnp.max(wei, axis=-1, keepdims=True)
    e = jnp.exp(wei - m)
    s = jnp.sum(e, axis=-1, keepdims=True)
    p = e * pl.reciprocal(s, approx=True)

    # TODO(synk): dropout is identity here (eval mode); training-mode dropout
    # would need pltpu.prng_seed / pltpu.prng_random_bits in-kernel.

    out = jnp.einsum('gqk,gkh->gqh', p.astype(jnp.bfloat16), v,
                     preferred_element_type=jnp.float32)               # (G, T, H) f32
    o_ref[...] = out.astype(o_ref.dtype)


def _pick_group(B, T):
    """Largest divisor of B keeping the (G*T, C) block modest; prefer grid >= 2."""
    g = 1
    for cand in range(1, B + 1):
        if B % cand == 0 and cand * T <= 1024:
            g = cand
    if g == B and B >= 2:  # keep >= 2 grid steps so v7x's 2 TCs both get work
        g = max(d for d in range(1, B) if B % d == 0)
    return g


def head_forward(x, w_key, w_query, w_value):
    """x: (B, T, C) f32;  w_*: (head_size, C) f32  ->  (B, T, head_size) f32."""
    B, T, C = x.shape
    H = w_key.shape[0]
    G = _pick_group(B, T)
    assert B % G == 0

    # Fuse + pre-transpose the three projection weights into one (C, 3H) slab
    # (static wrapper-side layout plumbing, order = [q|k|v]); MXU inputs bf16.
    w_qkv = jnp.concatenate([w_query, w_key, w_value], axis=0).T.astype(jnp.bfloat16)
    x_bf16 = x.astype(jnp.bfloat16)

    return pl.pallas_call(
        _head_kernel,
        out_shape=jax.ShapeDtypeStruct((B, T, H), x.dtype),
        grid_spec=pltpu.PrefetchScalarGridSpec(
            num_scalar_prefetch=0,
            grid=(B // G,),
            in_specs=[
                pl.BlockSpec((G, T, C), lambda b: (b, 0, 0)),
                pl.BlockSpec((C, 3 * H), lambda b: (0, 0)),
            ],
            out_specs=pl.BlockSpec((G, T, H), lambda b: (b, 0, 0)),
        ),
        compiler_params=pltpu.CompilerParams(
            dimension_semantics=("parallel",)),
    )(x_bf16, w_qkv)


def head_reference(x, w_key, w_query, w_value):
    """Pure-JAX f32 reference for correctness checking."""
    B, T, C = x.shape
    k = x @ w_key.T
    q = x @ w_query.T
    v = x @ w_value.T
    wei = (q @ jnp.swapaxes(k, -2, -1)) * (C ** -0.5)
    row = jnp.arange(T)[:, None]
    col = jnp.arange(T)[None, :]
    wei = jnp.where(col <= row, wei, -jnp.inf)
    wei = jax.nn.softmax(wei, axis=-1)
    return wei @ v


if __name__ == "__main__":
    key = jax.random.PRNGKey(0)
    k_x, k_wk, k_wq, k_wv = jax.random.split(key, 4)

    B, T, C, H = BATCH, SEQ_LEN, N_EMBED, HEAD_SIZE

    x = jax.random.normal(k_x, (B, T, C), dtype=jnp.float32)
    # Deterministic "nn.Linear"-style init (uniform in [-1/sqrt(C), 1/sqrt(C)])
    bound = 1.0 / (C ** 0.5)
    w_key_p = jax.random.uniform(k_wk, (H, C), jnp.float32, -bound, bound)
    w_query_p = jax.random.uniform(k_wq, (H, C), jnp.float32, -bound, bound)
    w_value_p = jax.random.uniform(k_wv, (H, C), jnp.float32, -bound, bound)

    out = head_forward(x, w_key_p, w_query_p, w_value_p)
    out = jax.block_until_ready(out)

    ref = head_reference(x, w_key_p, w_query_p, w_value_p)
    assert out.shape == (B, T, H)
    # bf16 matmul inputs + approx reciprocal -> relaxed tolerance vs f32 ref.
    assert jnp.allclose(out, ref, rtol=2e-2, atol=2e-2), "mismatch vs reference"

    print("KERNEL_OK")
</pallas_src>

<mosaic_0001>
module attributes {stable_mosaic.version = 11 : i64} {
  func.func @_head_kernel(%arg0: i32, %arg1: memref<4x64x128xbf16, #tpu.memory_space<vmem>>, %arg2: memref<128x192xbf16, #tpu.memory_space<vmem>>, %arg3: memref<4x64x64xf32, #tpu.memory_space<vmem>>) attributes {dimension_semantics = [#tpu.dimension_semantics<parallel>], iteration_bounds = array<i64: 2>, scalar_prefetch = 0 : i64, scratch_operands = 0 : i64, tpu.core_type = #tpu.core_type<tc>, window_params = [{transform_indices = @transform_0, window_bounds = array<i64: 4, 64, 128>}, {pipeline_mode = #tpu.pipeline_mode<synchronous>, transform_indices = @transform_1, window_bounds = array<i64: 128, 192>}, {transform_indices = @transform_2, window_bounds = array<i64: 4, 64, 64>}]} {
    %c0 = arith.constant 0 : index
    %c0_0 = arith.constant 0 : index
    %c0_1 = arith.constant 0 : index
    %0 = vector.load %arg1[%c0, %c0_0, %c0_1] : memref<4x64x128xbf16, #tpu.memory_space<vmem>>, vector<4x64x128xbf16>
    %1 = vector.shape_cast %0 : vector<4x64x128xbf16> to vector<256x128xbf16>
    %c0_2 = arith.constant 0 : index
    %c0_3 = arith.constant 0 : index
    %2 = vector.load %arg2[%c0_2, %c0_3] : memref<128x192xbf16, #tpu.memory_space<vmem>>, vector<128x192xbf16>
    %cst = arith.constant dense<0.000000e+00> : vector<256x192xf32>
    %3 = tpu.matmul %1, %2, %cst {dimension_numbers = #tpu.dot_dimension_numbers<[1], [0], [0], [1], [0, 0, 1, 1], [], []>} : vector<256x128xbf16>, vector<128x192xbf16>, vector<256x192xf32> -> vector<256x192xf32>
    %4 = vector.shape_cast %3 : vector<256x192xf32> to vector<4x64x192xf32>
    %cst_4 = arith.constant 1.280000e+02 : f32
    %cst_5 = arith.constant -5.000000e-01 : f32
    %5 = math.powf %cst_4, %cst_5 : f32
    %6 = vector.extract_strided_slice %4 {offsets = [0, 0, 0], sizes = [4, 64, 64], strides = [1, 1, 1]} : vector<4x64x192xf32> to vector<4x64x64xf32>
    %7 = vector.broadcast %5 : f32 to vector<4x64x64xf32>
    %8 = arith.mulf %6, %7 : vector<4x64x64xf32>
    %9 = arith.truncf %8 : vector<4x64x64xf32> to vector<4x64x64xbf16>
    %10 = vector.extract_strided_slice %4 {offsets = [0, 0, 64], sizes = [4, 64, 64], strides = [1, 1, 1]} : vector<4x64x192xf32> to vector<4x64x64xf32>
    %11 = arith.truncf %10 : vector<4x64x64xf32> to vector<4x64x64xbf16>
    %12 = vector.extract_strided_slice %4 {offsets = [0, 0, 128], sizes = [4, 64, 64], strides = [1, 1, 1]} : vector<4x64x192xf32> to vector<4x64x64xf32>
    %13 = arith.truncf %12 : vector<4x64x64xf32> to vector<4x64x64xbf16>
    "tpu.trace_start"() <{level = 10 : i32, message = "gqh,gkh->gqk"}> : () -> ()
    %cst_6 = arith.constant dense<0.000000e+00> : vector<4x64x64xf32>
    %14 = tpu.matmul %9, %11, %cst_6 {dimension_numbers = #tpu.dot_dimension_numbers<[2], [2], [1], [1], [0, 0, 0, 1, 1, 1], [0], [0]>} : vector<4x64x64xbf16>, vector<4x64x64xbf16>, vector<4x64x64xf32> -> vector<4x64x64xf32>
    "tpu.trace_stop"() : () -> ()
    %15 = tpu.iota {dimensions = array<i32: 0>} : vector<64x64xi32>
    %16 = tpu.iota {dimensions = array<i32: 1>} : vector<64x64xi32>
    %17 = arith.cmpi sle, %16, %15 : vector<64x64xi32>
    %18 = vector.shape_cast %17 : vector<64x64xi1> to vector<1x64x64xi1>
    %cst_7 = arith.constant 0xFF800000 : f32
    %19 = vector.shape_cast %18 : vector<1x64x64xi1> to vector<1x64x64xi1>
    %20 = vector.broadcast %19 : vector<1x64x64xi1> to vector<4x64x64xi1>
    %21 = vector.broadcast %cst_7 : f32 to vector<4x64x64xf32>
    %22 = arith.select %20, %14, %21 : vector<4x64x64xi1>, vector<4x64x64xf32>
    %cst_8 = arith.constant dense<0xFF800000> : vector<4x64xf32>
    %23 = vector.multi_reduction <maximumf>, %22, %cst_8 [2] : vector<4x64x64xf32> to vector<4x64xf32>
    %24 = vector.shape_cast %23 : vector<4x64xf32> to vector<4x64x1xf32>
    %25 = vector.broadcast %24 : vector<4x64x1xf32> to vector<4x64x64xf32>
    %26 = arith.subf %22, %25 : vector<4x64x64xf32>
    %27 = math.exp %26 : vector<4x64x64xf32>
    %cst_9 = arith.constant dense<0.000000e+00> : vector<4x64xf32>
    %28 = vector.multi_reduction <add>, %27, %cst_9 [2] : vector<4x64x64xf32> to vector<4x64xf32>
    %29 = vector.shape_cast %28 : vector<4x64xf32> to vector<4x64x1xf32>
    %30 = tpu.reciprocal %29 {approx = true} : vector<4x64x1xf32> -> vector<4x64x1xf32>
    %31 = vector.broadcast %30 : vector<4x64x1xf32> to vector<4x64x64xf32>
    %32 = arith.mulf %27, %31 : vector<4x64x64xf32>
    %33 = arith.truncf %32 : vector<4x64x64xf32> to vector<4x64x64xbf16>
    "tpu.trace_start"() <{level = 10 : i32, message = "gqk,gkh->gqh"}> : () -> ()
    %cst_10 = arith.constant dense<0.000000e+00> : vector<4x64x64xf32>
    %34 = tpu.matmul %33, %13, %cst_10 {dimension_numbers = #tpu.dot_dimension_numbers<[2], [1], [1], [2], [0, 0, 0, 1, 1, 2], [0], [0]>} : vector<4x64x64xbf16>, vector<4x64x64xbf16>, vector<4x64x64xf32> -> vector<4x64x64xf32>
    "tpu.trace_stop"() : () -> ()
    %c0_11 = arith.constant 0 : index
    %c0_12 = arith.constant 0 : index
    %c0_13 = arith.constant 0 : index
    %35 = vector.load %arg3[%c0_11, %c0_12, %c0_13] : memref<4x64x64xf32, #tpu.memory_space<vmem>>, vector<4x64x64xf32>
    tpu.vector_store %arg3[%c0_11, %c0_12, %c0_13], %34 {strides = array<i32>} : memref<4x64x64xf32, #tpu.memory_space<vmem>>, vector<4x64x64xf32>,
    return
  }
  func.func @transform_0(%arg0: i32) -> (i32, i32, i32) {
    %c0_i32 = arith.constant 0 : i32
    %c0_i32_0 = arith.constant 0 : i32
    %c0_i32_1 = arith.constant 0 : i32
    return %arg0, %c0_i32, %c0_i32_0 : i32, i32, i32
  }
  func.func @transform_1(%arg0: i32) -> (i32, i32) {
    %c0_i32 = arith.constant 0 : i32
    %c0_i32_0 = arith.constant 0 : i32
    %c0_i32_1 = arith.constant 0 : i32
    return %c0_i32, %c0_i32_0 : i32, i32
  }
  func.func @transform_2(%arg0: i32) -> (i32, i32, i32) {
    %c0_i32 = arith.constant 0 : i32
    %c0_i32_0 = arith.constant 0 : i32
    %c0_i32_1 = arith.constant 0 : i32
    return %arg0, %c0_i32, %c0_i32_0 : i32, i32, i32
  }
}

</mosaic_0001>

<bundles_post_ra>
// kernel: tpu_custom_call.1
= control target key start
LH: loop header
LB: loop body
LE: loop exit
PB: predicated region body
PF: predicated region fallthrough
CT: control target
= control target key end

     0   :  { %7 = vsyncpa [#allocation3], 0  ;;  %s3612_s0 = inlined_call_operand.hbm [shape: bf16[8,64,128], index: 0, kind: input, shape index: {}]   ;;  %s3613_s1 = inlined_call_operand.vmem [shape: bf16[128,192], index: 1, kind: input, shape index: {}]   ;;  %s3614_s2 = inlined_call_operand.hbm [shape: f32[8,64,64], index: 2, kind: output, shape index: {}]  }
   0x1   :  { %9 = vsyncpa [#allocation3 + $0x1], 0 }
   0x2   :  { %10 = vsyncpa [#allocation4], 0 }
   0x3   :  { %12 = vsyncpa [#allocation4 + $0x1], 0  ;;  %s2572_s9 = smov 0   ;;  %s2574_s10 = smov 0  }
   0x4   :  { %s2576_s11 = smov 0   ;;  %s2578_s12 = smov 0  }
   0x5 LB: > { %s2593_s13 = sadd.s32 4294967295, %s2547_s12   ;;  %s1931_s14 = sadd.s32 4294967294, %s2547_s12   ;;  %s2547_s12 = sphi %s2578_s12, %s3629_s12   ;;  %s2543_s11 = sphi %s2576_s11, %s3628_s11   ;;  %s2539_s10 = sphi %s2574_s10, %s3627_s10   ;;  %s2535_s9 = sphi %s2572_s9, %s3626_s9  }
   0x6   : > { %s2597_s15 = sadd.s32 1, %s2547_s12   ;;  %s25_s16 = sadd.s32 1, %s2543_s11 }
   0x7   : > { %s22_s17 = ssub.s32 %s2547_s12, %s2597_s15  ;;  %p32_p0 = scmp.ne.s32.totalorder %s2543_s11, %s2539_s10 }
   0x8   : > { %p23_p1 = scmp.eq.s32.totalorder %s22_s17, 0  ;;  %p33_p2 = scmp.eq.s32.totalorder %s2547_s12, 0 }
   0x9   : > { %p38_p3 = scmp.ne.s32.totalorder %s2539_s10, %s2535_s9  ;;  %p39_p4 = scmp.eq.s32.totalorder %s2593_s13, 0 }
   0xa   : > { %s2609_s18 = scalar_select %p23_p1, %s2543_s11, %s25_s16  }
   0xb   : > { %p2611_p5 = por %p33_p2, %p32_p0  ;;  %p2615_p6 = por %p39_p4, %p38_p3 }
   0xc   : > { %p83_p7 = scmp.eq.s32.totalorder %s2593_s13, 1  ;;  %p89_p8 = scmp.eq.s32.totalorder %s1931_s14, 1 }
   0xd   : > { %p2243_p10 = scmp.lt.s32.totalorder %s2547_s12, 2  ;;  %s112_s23 = sand.u32 1, %s2543_s11  }
   0xe   : > { %p2622_p11 = por %p83_p7, %p32_p0  ;;  %p2626_p12 = por %p89_p8, %p38_p3 }
   0xf   : > { %s2012_s24 = sshll.u32 %s2547_s12, 11  ;;  %s1934_s25 = sshll.u32 %s112_s23, 7 }
  0x10   : > { %s3618_s21 = scalar_select %p2622_p11, 1, 0 }
  0x11   : > { %s3619_s22 = scalar_select %p2626_p12, 1, 0 }
  0x12   : > { %s2635_s28 = scalar_lea.hbm %s3612_s0, %s2012_s24  ;;  %s116_s29 = scalar_lea.vmem [#allocation2], %s1934_s25 }
  0x13   : > { %s124_s30 = sshll.u32 %s116_s29, 4  ;;  %p2639_p13 = pnand %p2243_p10, %p2611_p5  ;;  %s2643_s30 = int_to_ptr.vmem [resolvable:$true] %s124_s30 }
  0x14   : > { %s2645_s4 = scalar_lea.sflag [#allocation3], %s112_s23  ;;  %s2451_s5 = scalar_lea.hbm %s2635_s28, 2048 }
  0x15   : > { %p2452_p0 = scmp.ne.s32.totalorder %s2635_s28, %s2451_s5  ;;  %p2453_p1 = pneg %p2639_p13 }
  0x16   : > { %s2456_s8 = scalar_lea.hbm %s3612_s0, 4096  ;;  %p2457_p4 = scmp.lt.u32.totalorder %s2635_s28, %s3612_s0 }
  0x17   : > { %p2454_p2 = pnand %p2453_p1, %p2452_p0  ;;  %p2458_p5 = scmp.lt.u32.totalorder %s2456_s8, %s2451_s5 }
  0x18   : > { %p2460_p8 = scmp.lt.u32.totalorder %s2451_s5, %s2635_s28 }
  0x19   : > { %p2455_p3 = pneg %p2454_p2  ;;  %p2459_p7 = por %p2458_p5, %p2457_p4 }
  0x1b   : > { %p2461_p10 = por %p2460_p8, %p2459_p7 }
  0x1d   : > { %p2462_p9 = pnand %p2461_p10, %p2455_p3 }
  0x1f   : > { %2465 = shalt.err (!%p2462_p9)
}
  0x20   : > { %s2466_s17 = scalar_lea.vmem %s2643_s30, 2048  ;;  %s2549_s19 = smov [#allocation2]  }
  0x21   : > { %p2467_p0 = scmp.ne.s32.totalorder %s2643_s30, %s2466_s17  ;;  %s2471_s23 = sshll.u32 %s2549_s19, 4  ;;  %s2472_s23 = int_to_ptr.vmem [resolvable:$false] %s2471_s23 }
  0x22   : > { %s2473_s24 = scalar_lea.vmem %s2472_s23, 4096  ;;  %p2474_p11 = scmp.lt.s32.totalorder %s2643_s30, %s2472_s23 }
  0x23   : > { %p2469_p2 = pnand %p2467_p0, %p2453_p1  ;;  %p2475_p4 = scmp.lt.s32.totalorder %s2473_s24, %s2466_s17 }
  0x25   : > { %p2470_p12 = pneg %p2469_p2  ;;  %p2476_p5 = por %p2475_p4, %p2474_p11 }
  0x27   : > { %p2477_p7 = pnand %p2476_p5, %p2470_p12 }
  0x29   : > { %2480 = shalt.err (!%p2477_p7)
}
  0x2a   : > { %s2550_s25 = smov 64   ;;  %s2551_s26 = smov 4  }
  0x2b   : > { %2238 = dma.hbm_to_vmem [thread:$0]  (!%p2639_p13), %s2635_s28, 2048, %s2643_s30, %s2645_s4, %s2550_s25, %s2550_s25, %s2551_s26  }
  0x2c   : > { %p1938_p9 = scmp.ge.s32.totalorder %s2547_s12, 1  ;;  %p132_p1 = scmp.lt.s32.totalorder %s2547_s12, 3 }
  0x2e   : > { %p133_p3 = pnand %p1938_p9, %p132_p1 }
  0x2f   : > { %s2676_s27 = sand.u32 (!%p133_p3), 1, %s2539_s10  }
  0x30   : > { %136 = sbr.rel (%p133_p3) target bundleno = 1322 (0x52a), region = 28  ;;  %s1939_s29 = sshll.u32 (!%p133_p3), %s2676_s27, 7 }
  0x31   : > { %s139_s5 = scalar_lea.sflag (!%p133_p3), [#allocation3], %s2676_s27  ;;  %s2680_s6 = scalar_lea.vmem (!%p133_p3), [#allocation2], %s1939_s29 }
  0x37   : > { %2526 = dma.done.wait (%p2615_p6), %s139_s5, 2048  }
  0x38   : > { %2528 = vsyncadd (%p2615_p6), %s139_s5, 4294965248  ;;  %v2552_v0 = vmov 0   ;;  %v2283_v1 = vld [vmem:[%s3613_s1 + $0x4] ss:$8 sps:$4 sm:$0xff]   ;;  %v2285_v2 = vld [vmem:[%s3613_s1] ss:$8 sps:$4 sm:$0xff]  }
  0x39   : > { %422 = vmatprep.mubr.bf16.mxu0 %v2552_v0  ;;  %390 = vmatprep.subr.bf16.mxu0 %v2283_v1  ;;  %v2286_v3 = vld [vmem:[%s3613_s1 + $0x14] ss:$8 sps:$4 sm:$0xff]   ;;  %v2288_v4 = vld [vmem:[%s3613_s1 + $0x10] ss:$8 sps:$4 sm:$0xff]   ;;  %v2289_v5 = vld [vmem:[%s3613_s1 + $0x24] ss:$8 sps:$4 sm:$0xff]  }
  0x3a   : > { %391 = vmatpush1.bf16.msra.mxu0 %v2285_v2  ;;  %v2291_v6 = vld [vmem:[%s3613_s1 + $0x20] ss:$8 sps:$4 sm:$0xff]   ;;  %v2292_v7 = vld [vmem:[%s3613_s1 + $0x34] ss:$8 sps:$4 sm:$0xff]   ;;  %v2294_v8 = vld [vmem:[%s3613_s1 + $0x30] ss:$8 sps:$4 sm:$0xff]  }
  0x3b   : > { %392 = vmatprep.subr.bf16.mxu0 %v2286_v3  ;;  %v2295_v9 = vld [vmem:[%s3613_s1 + $0x44] ss:$8 sps:$4 sm:$0xff]   ;;  %v2297_v10 = vld [vmem:[%s3613_s1 + $0x40] ss:$8 sps:$4 sm:$0xff]   ;;  %v2298_v11 = vld [vmem:[%s3613_s1 + $0x54] ss:$8 sps:$4 sm:$0xff]  }
  0x3c   : > { %v2300_v12 = vld [vmem:[%s3613_s1 + $0x50] ss:$8 sps:$4 sm:$0xff]   ;;  %v2301_v13 = vld [vmem:[%s3613_s1 + $0x64] ss:$8 sps:$4 sm:$0xff]   ;;  %v2303_v14 = vld [vmem:[%s3613_s1 + $0x60] ss:$8 sps:$4 sm:$0xff]  }
  0x3d   : > { %v2304_v15 = vld [vmem:[%s3613_s1 + $0x74] ss:$8 sps:$4 sm:$0xff]   ;;  %v2306_v16 = vld [vmem:[%s3613_s1 + $0x70] ss:$8 sps:$4 sm:$0xff]   ;;  %v2307_v17 = vld [vmem:[%s2680_s6] sm:$0xff]   ;;  %vm675_vm0 = vcmask 523264  }
  0x3e   : > { %393 = vmatpush1.bf16.msra.mxu0 %v2288_v4  ;;  %v2308_v18 = vld [vmem:[%s2680_s6 + $0x8] sm:$0xff]   ;;  %v2309_v19 = vld [vmem:[%s2680_s6 + $0x10] sm:$0xff]   ;;  %v2310_v20 = vld [vmem:[%s2680_s6 + $0x18] sm:$0xff]   ;;  %s2553_s29 = smov 64   ;;  %s2014_s28 = sshll.u32 %s2593_s13, 12 }
  0x3f   : > { %394 = vmatprep.subr.bf16.mxu0 %v2289_v5  ;;  %v2311_v21 = vld [vmem:[%s2680_s6 + $0x20] sm:$0xff]   ;;  %v2312_v22 = vld [vmem:[%s2680_s6 + $0x28] sm:$0xff]   ;;  %v2313_v23 = vld [vmem:[%s2680_s6 + $0x30] sm:$0xff]   ;;  %s3560_s7 = scalar_lea.hbm %s3614_s2, %s2014_s28  ;;  %s1844_s13 = scalar_lea.sflag [#allocation4], %s2676_s27 }
  0x40   : > { %v2314_v24 = vld [vmem:[%s2680_s6 + $0x38] sm:$0xff]   ;;  %v2315_v25 = vld [vmem:[%s2680_s6 + $0x40] sm:$0xff]   ;;  %v2316_v26 = vld [vmem:[%s2680_s6 + $0x48] sm:$0xff]   ;;  %p3623_p11 = scmp.ne.s32.totalorder %s3618_s21, 0  ;;  %s2554_s14 = smov [#allocation5]  }
  0x41   : > { %v2317_v27 = vld [vmem:[%s2680_s6 + $0x50] sm:$0xff]   ;;  %v2318_v28 = vld [vmem:[%s2680_s6 + $0x58] sm:$0xff]   ;;  %v2319_v29 = vld [vmem:[%s2680_s6 + $0x60] sm:$0xff]   ;;  %s2485_s20 = sshll.u32 %s2554_s14, 4  ;;  %s2486_s20 = int_to_ptr.vmem [resolvable:$false] %s2485_s20 }
  0x42   : > { %395 = vmatpush1.bf16.msra.mxu0 %v2291_v6  ;;  %v2320_v30 = vld [vmem:[%s2680_s6 + $0x68] sm:$0xff]   ;;  %v2321_v31 = vld [vmem:[%s2680_s6 + $0x70] sm:$0xff]   ;;  %v2322_v32 = vld [vmem:[%s2680_s6 + $0x78] sm:$0xff]   ;;  %s1940_s6 = sshll.u32 %s2676_s27, 8  ;;  %s2487_s16 = scalar_lea.vmem %s2486_s20, 8192 }
  0x43   : > { %396 = vmatprep.subr.bf16.mxu0 %v2292_v7  ;;  %s3495_s5 = scalar_lea.vmem [#allocation5], %s1940_s6 }
  0x44   : > { %s1858_s30 = sshll.u32 %s3495_s5, 4  ;;  %s3562_s30 = int_to_ptr.vmem [resolvable:$true] %s1858_s30 }
  0x45   : > { %s2481_s8 = scalar_lea.vmem %s3562_s30, 4096  ;;  %p2488_p8 = scmp.lt.s32.totalorder %s3562_s30, %s2486_s20 }
  0x46   : > { %397 = vmatpush1.bf16.msra.mxu0 %v2294_v8  ;;  %p2482_p6 = scmp.ne.s32.totalorder %s3562_s30, %s2481_s8  ;;  %p2489_p10 = scmp.lt.s32.totalorder %s2487_s16, %s2481_s8 }
  0x47   : > { %398 = vmatprep.subr.bf16.mxu0 %v2295_v9 }
  0x48   : > { %p2483_p12 = pnand %p2482_p6, %p3623_p11  ;;  %p2490_p0 = por %p2489_p10, %p2488_p8 }
  0x4a   : > { %399 = vmatpush1.bf16.msra.mxu0 %v2297_v10  ;;  %p2484_p13 = pneg %p2483_p12 }
  0x4b   : > { %400 = vmatprep.subr.bf16.mxu0 %v2298_v11 }
  0x4c   : > { %p2491_p2 = pnand %p2490_p0, %p2484_p13 }
  0x4e   : > { %401 = vmatpush1.bf16.msra.mxu0 %v2300_v12 }
  0x4f   : > { %402 = vmatprep.subr.bf16.mxu0 %v2301_v13 }
  0x52   : > { %403 = vmatpush1.bf16.msra.mxu0 %v2303_v14 }
  0x53   : > { %404 = vmatprep.subr.bf16.mxu0 %v2304_v15 }
  0x56   : > { %405 = vmatpush1.bf16.msra.mxu0 %v2306_v16 }
  0x59   : > { %423 = vmatmul.mubr.bf16.vlgmr.msra.gmra.mrb[0].mxu0 %v2307_v17 }
  0x5a   : > { %432 = vmatprep.mubr.bf16.mxu0 %v2552_v0 }
  0x61   : > { %433 = vmatmul.mubr.bf16.gmra.mrb[4].mxu0 %v2308_v18 }
  0x62   : > { %442 = vmatprep.mubr.bf16.mxu0 %v2552_v0 }
  0x69   : > { %443 = vmatmul.mubr.bf16.gmra.mrb[8].mxu0 %v2309_v19 }
  0x6a   : > { %452 = vmatprep.mubr.bf16.mxu0 %v2552_v0 }
  0x71   : > { %453 = vmatmul.mubr.bf16.gmra.mrb[12].mxu0 %v2310_v20 }
  0x72   : > { %462 = vmatprep.mubr.bf16.mxu0 %v2552_v0 }
  0x79   : > { %463 = vmatmul.mubr.bf16.gmra.mrb[16].mxu0 %v2311_v21 }
  0x7a   : > { %472 = vmatprep.mubr.bf16.mxu0 %v2552_v0 }
  0x81   : > { %473 = vmatmul.mubr.bf16.gmra.mrb[20].mxu0 %v2312_v22 }
  0x82   : > { %482 = vmatprep.mubr.bf16.mxu0 %v2552_v0 }
  0x89   : > { %483 = vmatmul.mubr.bf16.gmra.mrb[24].mxu0 %v2313_v23 }
  0x8a   : > { %492 = vmatprep.mubr.bf16.mxu0 %v2552_v0 }
  0x91   : > { %493 = vmatmul.mubr.bf16.gmra.mrb[28].mxu0 %v2314_v24 }
  0x92   : > { %502 = vmatprep.mubr.bf16.mxu0 %v2552_v0 }
  0x99   : > { %503 = vmatmul.mubr.bf16.gmra.mrb[32].mxu0 %v2315_v25 }
  0x9a   : > { %512 = vmatprep.mubr.bf16.mxu0 %v2552_v0 }
  0xa1   : > { %513 = vmatmul.mubr.bf16.gmra.mrb[36].mxu0 %v2316_v26 }
  0xa2   : > { %522 = vmatprep.mubr.bf16.mxu0 %v2552_v0 }
  0xa9   : > { %523 = vmatmul.mubr.bf16.gmra.mrb[40].mxu0 %v2317_v27 }
  0xaa   : > { %532 = vmatprep.mubr.bf16.mxu0 %v2552_v0 }
  0xb1   : > { %533 = vmatmul.mubr.bf16.gmra.mrb[44].mxu0 %v2318_v28 }
  0xb2   : > { %542 = vmatprep.mubr.bf16.mxu0 %v2552_v0 }
  0xb9   : > { %543 = vmatmul.mubr.bf16.gmra.mrb[48].mxu0 %v2319_v29 }
  0xba   : > { %552 = vmatprep.mubr.bf16.mxu0 %v2552_v0 }
  0xc1   : > { %553 = vmatmul.mubr.bf16.gmra.mrb[52].mxu0 %v2320_v30 }
  0xc2   : > { %562 = vmatprep.mubr.bf16.mxu0 %v2552_v0 }
  0xc9   : > { %563 = vmatmul.mubr.bf16.gmra.mrb[56].mxu0 %v2321_v31 }
  0xca   : > { %572 = vmatprep.mubr.bf16.mxu0 %v2552_v0 }
  0xd1   : > { %573 = vmatmul.mubr.bf16.gmra.mrb[60].mxu0 %v2322_v32 }
 0x12c   : > { %v424_v33 = vpop.f32.mrb[0].mxu0 }
 0x12d   : > { %v426_v34 = vpop.f32.mrb[1].mxu0  ;;  %v583_v36 = vmul.f32 0.088388346, %v424_v33 }
 0x12e   : > { %v428_v35 = vpop.f32.mrb[2].mxu0 }
 0x12f   : > { %v584_v37 = vmul.f32 0.088388346, %v428_v35  ;;  %v430_v38 = vpop.f32.mrb[3].mxu0  ;;  %v631_v39 = vpack.c.bf16 %v428_v35, %v424_v33 }
 0x130   : > { %v2766_v40 = vpack.c.bf16 %v430_v38, %v426_v34 }
 0x131   : > { %667 = vrot.lane.b32.xlu0 %v631_v39, %s2553_s29  ;;  %v615_v41 = vpack.c.bf16 %v584_v37, %v583_v36 }
 0x133   : > { %2087 = vmatprep.mubr.msk.bf16.mxu1 %vm675_vm0, %v615_v41 }
 0x134   : > { %v434_v42 = vpop.f32.mrb[4].mxu0 }
 0x135   : > { %v436_v43 = vpop.f32.mrb[5].mxu0  ;;  %v2770_v45 = vmul.f32 0.088388346, %v434_v42 }
 0x136   : > { %v438_v44 = vpop.f32.mrb[6].mxu0 }
 0x137   : > { %v2772_v46 = vmul.f32 0.088388346, %v438_v44  ;;  %v632_v47 = vpack.c.bf16 %v438_v44, %v434_v42  ;;  %v440_v48 = vpop.f32.mrb[7].mxu0 }
 0x138   : > { %v2774_v49 = vpack.c.bf16 %v440_v48, %v436_v43 }
 0x139   : > { %v616_v50 = vpack.c.bf16 %v2772_v46, %v2770_v45  ;;  %669 = vrot.lane.b32.xlu0 %v632_v47, %s2553_s29 }
 0x13c   : > { %v444_v51 = vpop.f32.mrb[8].mxu0 }
 0x13d   : > { %v446_v52 = vpop.f32.mrb[9].mxu0  ;;  %v2779_v54 = vmul.f32 0.088388346, %v444_v51 }
 0x13e   : > { %v448_v53 = vpop.f32.mrb[10].mxu0 }
 0x13f   : > { %v2781_v55 = vmul.f32 0.088388346, %v448_v53  ;;  %v450_v56 = vpop.f32.mrb[11].mxu0  ;;  %v633_v57 = vpack.c.bf16 %v448_v53, %v444_v51 }
 0x140   : > { %v2783_v58 = vpack.c.bf16 %v450_v56, %v446_v52 }
 0x141   : > { %v617_v59 = vpack.c.bf16 %v2781_v55, %v2779_v54  ;;  %671 = vrot.lane.b32.xlu1 %v633_v57, %s2553_s29 }
 0x144   : > { %v454_v60 = vpop.f32.mrb[12].mxu0 }
 0x145   : > { %v456_v61 = vpop.f32.mrb[13].mxu0  ;;  %v2788_v63 = vmul.f32 0.088388346, %v454_v60 }
 0x146   : > { %v458_v62 = vpop.f32.mrb[14].mxu0 }
 0x147   : > { %v2790_v0 = vmul.f32 0.088388346, %v458_v62  ;;  %v634_v1 = vpack.c.bf16 %v458_v62, %v454_v60  ;;  %v460_v2 = vpop.f32.mrb[15].mxu0 }
 0x148   : > { %v2792_v3 = vpack.c.bf16 %v460_v2, %v456_v61 }
 0x149   : > { %v618_v4 = vpack.c.bf16 %v2790_v0, %v2788_v63  ;;  %673 = vrot.lane.b32.xlu1 %v634_v1, %s2553_s29 }
 0x14c   : > { %v464_v5 = vpop.f32.mrb[16].mxu0 }
 0x14d   : > { %v466_v6 = vpop.f32.mrb[17].mxu0  ;;  %v2797_v8 = vmul.f32 0.088388346, %v464_v5 }
 0x14e   : > { %v468_v7 = vpop.f32.mrb[18].mxu0 }
 0x14f   : > { %v2799_v9 = vmul.f32 0.088388346, %v468_v7  ;;  %v635_v10 = vpack.c.bf16 %v468_v7, %v464_v5  ;;  %v470_v11 = vpop.f32.mrb[19].mxu0 }
 0x150   : > { %v651_v12 = vpack.c.bf16 %v470_v11, %v466_v6 }
 0x151   : > { %v619_v13 = vpack.c.bf16 %v2799_v9, %v2797_v8  ;;  %769 = vrot.lane.b32.xlu0 %v635_v10, %s2553_s29 }
 0x152   : > { %2159 = vmatprep.subr.bf16.mxu0 %v651_v12 }
 0x153   : > { %2160 = vmatpush3.bf16.msra.mxu0 %v651_v12 }
 0x154   : > { %v474_v14 = vpop.f32.mrb[20].mxu0 }
 0x155   : > { %v476_v15 = vpop.f32.mrb[21].mxu0  ;;  %v2804_v17 = vmul.f32 0.088388346, %v474_v14 }
 0x156   : > { %v478_v16 = vpop.f32.mrb[22].mxu0 }
 0x157   : > { %v2806_v18 = vmul.f32 0.088388346, %v478_v16  ;;  %v636_v19 = vpack.c.bf16 %v478_v16, %v474_v14  ;;  %v480_v20 = vpop.f32.mrb[23].mxu0 }
 0x158   : > { %v652_v21 = vpack.c.bf16 %v480_v20, %v476_v15 }
 0x159   : > { %v620_v22 = vpack.c.bf16 %v2806_v18, %v2804_v17  ;;  %771 = vrot.lane.b32.xlu1 %v636_v19, %s2553_s29 }
 0x15a   : > { %2161 = vmatprep.subr.bf16.mxu0 %v652_v21 }
 0x15b   : > { %2162 = vmatpush3.bf16.msra.mxu0 %v652_v21 }
 0x15c   : > { %v484_v23 = vpop.f32.mrb[24].mxu0 }
 0x15d   : > { %v486_v24 = vpop.f32.mrb[25].mxu0  ;;  %v2811_v26 = vmul.f32 0.088388346, %v484_v23 }
 0x15e   : > { %v488_v25 = vpop.f32.mrb[26].mxu0 }
 0x15f   : > { %v2813_v27 = vmul.f32 0.088388346, %v488_v25  ;;  %v637_v28 = vpack.c.bf16 %v488_v25, %v484_v23  ;;  %v490_v29 = vpop.f32.mrb[27].mxu0 }
 0x160   : > { %v653_v30 = vpack.c.bf16 %v490_v29, %v486_v24 }
 0x161   : > { %v621_v31 = vpack.c.bf16 %v2813_v27, %v2811_v26  ;;  %773 = vrot.lane.b32.xlu0 %v637_v28, %s2553_s29 }
 0x162   : > { %2163 = vmatprep.subr.bf16.mxu0 %v653_v30 }
 0x163   : > { %2164 = vmatpush3.bf16.msra.mxu0 %v653_v30 }
 0x164   : > { %v494_v32 = vpop.f32.mrb[28].mxu0 }
 0x165   : > { %v496_v33 = vpop.f32.mrb[29].mxu0  ;;  %v2818_v35 = vmul.f32 0.088388346, %v494_v32 }
 0x166   : > { %v498_v34 = vpop.f32.mrb[30].mxu0 }
 0x167   : > { %v2820_v36 = vmul.f32 0.088388346, %v498_v34  ;;  %v638_v37 = vpack.c.bf16 %v498_v34, %v494_v32  ;;  %v500_v38 = vpop.f32.mrb[31].mxu0 }
 0x168   : > { %v654_v39 = vpack.c.bf16 %v500_v38, %v496_v33 }
 0x169   : > { %v622_v41 = vpack.c.bf16 %v2820_v36, %v2818_v35  ;;  %775 = vrot.lane.b32.xlu1 %v638_v37, %s2553_s29 }
 0x16a   : > { %2165 = vmatprep.subr.bf16.mxu0 %v654_v39 }
 0x16b   : > { %2166 = vmatpush3.bf16.msra.mxu0 %v654_v39 }
 0x16c   : > { %v504_v42 = vpop.f32.mrb[32].mxu0 }
 0x16d   : > { %v506_v43 = vpop.f32.mrb[33].mxu0  ;;  %v2825_v47 = vmul.f32 0.088388346, %v504_v42 }
 0x16e   : > { %v508_v44 = vpop.f32.mrb[34].mxu0 }
 0x16f   : > { %v2827_v48 = vmul.f32 0.088388346, %v508_v44  ;;  %v639_v51 = vpack.c.bf16 %v508_v44, %v504_v42  ;;  %v510_v52 = vpop.f32.mrb[35].mxu0 }
 0x170   : > { %v2829_v53 = vpack.c.bf16 %v510_v52, %v506_v43 }
 0x171   : > { %v623_v56 = vpack.c.bf16 %v2827_v48, %v2825_v47  ;;  %870 = vrot.lane.b32.xlu0 %v639_v51, %s2553_s29 }
 0x174   : > { %v514_v57 = vpop.f32.mrb[36].mxu0 }
 0x175   : > { %v516_v60 = vpop.f32.mrb[37].mxu0  ;;  %v2834_v62 = vmul.f32 0.088388346, %v514_v57 }
 0x176   : > { %v518_v61 = vpop.f32.mrb[38].mxu0 }
 0x177   : > { %v2836_v1 = vmul.f32 0.088388346, %v518_v61  ;;  %v640_v2 = vpack.c.bf16 %v518_v61, %v514_v57  ;;  %v520_v5 = vpop.f32.mrb[39].mxu0 }
 0x178   : > { %v2838_v6 = vpack.c.bf16 %v520_v5, %v516_v60 }
 0x179   : > { %v624_v7 = vpack.c.bf16 %v2836_v1, %v2834_v62  ;;  %872 = vrot.lane.b32.xlu1 %v640_v2, %s2553_s29 }
 0x17c   : > { %v524_v10 = vpop.f32.mrb[40].mxu0 }
 0x17d   : > { %v526_v11 = vpop.f32.mrb[41].mxu0  ;;  %v2843_v14 = vmul.f32 0.088388346, %v524_v10 }
 0x17e   : > { %v528_v12 = vpop.f32.mrb[42].mxu0 }
 0x17f   : > { %v2845_v15 = vmul.f32 0.088388346, %v528_v12  ;;  %v641_v16 = vpack.c.bf16 %v528_v12, %v524_v10  ;;  %v530_v19 = vpop.f32.mrb[43].mxu0 }
 0x180   : > { %v2847_v20 = vpack.c.bf16 %v530_v19, %v526_v11 }
 0x181   : > { %v625_v21 = vpack.c.bf16 %v2845_v15, %v2843_v14  ;;  %874 = vrot.lane.b32.xlu0 %v641_v16, %s2553_s29 }
 0x184   : > { %v534_v23 = vpop.f32.mrb[44].mxu0 }
 0x185   : > { %v536_v24 = vpop.f32.mrb[45].mxu0  ;;  %v2852_v28 = vmul.f32 0.088388346, %v534_v23 }
 0x186   : > { %v538_v25 = vpop.f32.mrb[46].mxu0 }
 0x187   : > { %v2854_v29 = vmul.f32 0.088388346, %v538_v25  ;;  %v642_v30 = vpack.c.bf16 %v538_v25, %v534_v23  ;;  %v540_v32 = vpop.f32.mrb[47].mxu0 }
 0x188   : > { %v2856_v33 = vpack.c.bf16 %v540_v32, %v536_v24 }
 0x189   : > { %v626_v34 = vpack.c.bf16 %v2854_v29, %v2852_v28  ;;  %876 = vrot.lane.b32.xlu1 %v642_v30, %s2553_s29 }
 0x18c   : > { %v544_v37 = vpop.f32.mrb[48].mxu0 }
 0x18d   : > { %v546_v38 = vpop.f32.mrb[49].mxu0  ;;  %v2861_v42 = vmul.f32 0.088388346, %v544_v37 }
 0x18e   : > { %v548_v39 = vpop.f32.mrb[50].mxu0 }
 0x18f   : > { %v2863_v43 = vmul.f32 0.088388346, %v548_v39  ;;  %v643_v44 = vpack.c.bf16 %v548_v39, %v544_v37  ;;  %v550_v51 = vpop.f32.mrb[51].mxu0 }
 0x190   : > { %v2865_v52 = vpack.c.bf16 %v550_v51, %v546_v38 }
 0x191   : > { %v627_v57 = vpack.c.bf16 %v2863_v43, %v2861_v42  ;;  %971 = vrot.lane.b32.xlu0 %v643_v44, %s2553_s29 }
 0x192   : > { %2191 = vmatprep.subr.bf16.mxu0 %v2865_v52 }
 0x194   : > { %v554_v60 = vpop.f32.mrb[52].mxu0 }
 0x195   : > { %v556_v61 = vpop.f32.mrb[53].mxu0  ;;  %v2871_v5 = vmul.f32 0.088388346, %v554_v60 }
 0x196   : > { %v558_v2 = vpop.f32.mrb[54].mxu0 }
 0x197   : > { %v2873_v10 = vmul.f32 0.088388346, %v558_v2  ;;  %v644_v11 = vpack.c.bf16 %v558_v2, %v554_v60  ;;  %v560_v12 = vpop.f32.mrb[55].mxu0 }
 0x198   : > { %v2875_v16 = vpack.c.bf16 %v560_v12, %v556_v61 }
 0x199   : > { %973 = vrot.lane.b32.xlu1 %v644_v11, %s2553_s29 }
 0x19c   : > { %v564_v23 = vpop.f32.mrb[56].mxu0 }
 0x19d   : > { %v566_v24 = vpop.f32.mrb[57].mxu0  ;;  %v2880_v30 = vmul.f32 0.088388346, %v564_v23 }
 0x19e   : > { %v568_v25 = vpop.f32.mrb[58].mxu0 }
 0x19f   : > { %v2882_v32 = vmul.f32 0.088388346, %v568_v25  ;;  %v645_v37 = vpack.c.bf16 %v568_v25, %v564_v23  ;;  %v570_v38 = vpop.f32.mrb[59].mxu0 }
 0x1a0   : > { %v2884_v39 = vpack.c.bf16 %v570_v38, %v566_v24 }
 0x1a1   : > { %975 = vrot.lane.b32.xlu0 %v645_v37, %s2553_s29  ;;  %v3622_v47 = vpack.c.bf16 %v2882_v32, %v2880_v30 }
 0x1a3   : > { %v668_v51 = vpop.permute.xlu0 %667 }
 0x1a4   : > { %v574_v60 = vpop.f32.mrb[60].mxu0  ;;  %2215 = vmatprep.subr.msk.bf16.mxu1 %vm675_vm0, %v668_v51  ;;  %v689_v61 = vsel %vm675_vm0, %v668_v51, 0 }
 0x1a5   : > { %v576_v2 = vpop.f32.mrb[61].mxu0  ;;  %2080 = vmatpush3.bf16.xpose.msra.mxu1 %v689_v61  ;;  %v2891_v12 = vmul.f32 0.088388346, %v574_v60 }
 0x1a6   : > { %v578_v11 = vpop.f32.mrb[62].mxu0 }
 0x1a7   : > { %v2893_v23 = vmul.f32 0.088388346, %v578_v11  ;;  %v646_v24 = vpack.c.bf16 %v578_v11, %v574_v60  ;;  %v580_v25 = vpop.f32.mrb[63].mxu0 }
 0x1a8   : > { %v2895_v38 = vpack.c.bf16 %v580_v25, %v576_v2 }
 0x1a9   : > { %v630_v37 = vpack.c.bf16 %v2893_v23, %v2891_v12  ;;  %977 = vrot.lane.b32.xlu1 %v646_v24, %s2553_s29 }
 0x1ab   : > { %v670_v44 = vpop.permute.xlu0 %669 }
 0x1ac   : > { %2216 = vmatprep.subr.msk.bf16.mxu1 %vm675_vm0, %v670_v44  ;;  %v692_v51 = vsel %vm675_vm0, %v670_v44, 0 }
 0x1ad   : > { %2082 = vmatpush3.bf16.xpose.msra.mxu1 %v692_v51 }
 0x1b3   : > { %v672_v61 = vpop.permute.xlu1 %671 }
 0x1b4   : > { %2217 = vmatprep.subr.msk.bf16.mxu1 %vm675_vm0, %v672_v61  ;;  %v695_v19 = vsel %vm675_vm0, %v672_v61, 0 }
 0x1b5   : > { %2084 = vmatpush3.bf16.xpose.msra.mxu1 %v695_v19 }
 0x1bb   : > { %v674_v60 = vpop.permute.xlu1 %673 }
 0x1bc   : > { %2218 = vmatprep.subr.msk.bf16.mxu1 %vm675_vm0, %v674_v60  ;;  %v698_v2 = vsel %vm675_vm0, %v674_v60, 0 }
 0x1bd   : > { %2086 = vmatpush3.bf16.xpose.msra.mxu1 %v698_v2 }
 0x1c3   : > { %v770_v11 = vpop.permute.xlu0 %769 }
 0x1c4   : > { %v790_v24 = vsel %vm675_vm0, %v770_v11, 0  ;;  %2088 = vmatmul.mubr.msk.bf16.vlgmr.msra.gmra.mrb[0].mxu1 %vm675_vm0, %v616_v50  ;;  %2219 = vmatprep.subr.msk.bf16.mxu1 %vm675_vm0, %v770_v11 }
 0x1c5   : > { %2091 = vmatprep.mubr.msk.bf16.mxu1 %vm675_vm0, %v617_v59  ;;  %2096 = vmatpush3.bf16.xpose.msra.mxu1 %v790_v24 }
 0x1cb   : > { %v772_v19 = vpop.permute.xlu1 %771 }
 0x1cc   : > { %v793_v44 = vsel %vm675_vm0, %v772_v19, 0  ;;  %2092 = vmatmul.mubr.msk.bf16.gmra.mrb[4].mxu1 %vm675_vm0, %v618_v4  ;;  %2220 = vmatprep.subr.msk.bf16.mxu1 %vm675_vm0, %v772_v19 }
 0x1cd   : > { %2098 = vmatpush3.bf16.xpose.msra.mxu1 %v793_v44  ;;  %2103 = vmatprep.mubr.msk.bf16.mxu1 %vm675_vm0, %v619_v13 }
 0x1d3   : > { %v774_v45 = vpop.permute.xlu0 %773 }
 0x1d4   : > { %v796_v46 = vsel %vm675_vm0, %v774_v45, 0  ;;  %2221 = vmatprep.subr.msk.bf16.mxu1 %vm675_vm0, %v774_v45 }
 0x1d5   : > { %2100 = vmatpush3.bf16.xpose.msra.mxu1 %v796_v46 }
 0x1db   : > { %v776_v50 = vpop.permute.xlu1 %775 }
 0x1dc   : > { %v799_v54 = vsel %vm675_vm0, %v776_v50, 0  ;;  %2222 = vmatprep.subr.msk.bf16.mxu1 %vm675_vm0, %v776_v50 }
 0x1dd   : > { %2102 = vmatpush3.bf16.xpose.msra.mxu1 %v799_v54 }
 0x1e3   : > { %v871_v55 = vpop.permute.xlu0 %870 }
 0x1e4   : > { %v891_v59 = vsel %vm675_vm0, %v871_v55, 0  ;;  %2104 = vmatmul.mubr.msk.bf16.vlgmr.msra.gmra.mrb[8].mxu1 %vm675_vm0, %v620_v22  ;;  %2223 = vmatprep.subr.msk.bf16.mxu1 %vm675_vm0, %v871_v55 }
 0x1e5   : > { %2107 = vmatprep.mubr.msk.bf16.mxu1 %vm675_vm0, %v621_v31  ;;  %2112 = vmatpush3.bf16.xpose.msra.mxu1 %v891_v59 }
 0x1eb   : > { %v873_v63 = vpop.permute.xlu1 %872 }
 0x1ec   : > { %v894_v0 = vsel %vm675_vm0, %v873_v63, 0  ;;  %2108 = vmatmul.mubr.msk.bf16.gmra.mrb[12].mxu1 %vm675_vm0, %v622_v41  ;;  %2224 = vmatprep.subr.msk.bf16.mxu1 %vm675_vm0, %v873_v63  ;;  %v3621_v41 = vpack.c.bf16 %v2873_v10, %v2871_v5 }
 0x1ed   : > { %2114 = vmatpush3.bf16.xpose.msra.mxu1 %v894_v0  ;;  %2119 = vmatprep.mubr.msk.bf16.mxu1 %vm675_vm0, %v623_v56 }
 0x1f3   : > { %v875_v4 = vpop.permute.xlu0 %874 }
 0x1f4   : > { %v897_v8 = vsel %vm675_vm0, %v875_v4, 0  ;;  %2225 = vmatprep.subr.msk.bf16.mxu1 %vm675_vm0, %v875_v4 }
 0x1f5   : > { %2116 = vmatpush3.bf16.xpose.msra.mxu1 %v897_v8 }
 0x1fb   : > { %v877_v9 = vpop.permute.xlu1 %876 }
 0x1fc   : > { %v900_v13 = vsel %vm675_vm0, %v877_v9, 0  ;;  %2226 = vmatprep.subr.msk.bf16.mxu1 %vm675_vm0, %v877_v9 }
 0x1fd   : > { %2118 = vmatpush3.bf16.xpose.msra.mxu1 %v900_v13 }
 0x203   : > { %v972_v17 = vpop.permute.xlu0 %971 }
 0x204   : > { %v992_v18 = vsel %vm675_vm0, %v972_v17, 0  ;;  %2120 = vmatmul.mubr.msk.bf16.vlgmr.msra.gmra.mrb[16].mxu1 %vm675_vm0, %v624_v7  ;;  %2227 = vmatprep.subr.msk.bf16.mxu1 %vm675_vm0, %v972_v17 }
 0x205   : > { %2123 = vmatprep.mubr.msk.bf16.mxu1 %vm675_vm0, %v625_v21  ;;  %2128 = vmatpush3.bf16.xpose.msra.mxu1 %v992_v18 }
 0x20b   : > { %v974_v22 = vpop.permute.xlu1 %973 }
 0x20c   : > { %v995_v26 = vsel %vm675_vm0, %v974_v22, 0  ;;  %2124 = vmatmul.mubr.msk.bf16.gmra.mrb[20].mxu1 %vm675_vm0, %v626_v34  ;;  %2228 = vmatprep.subr.msk.bf16.mxu1 %vm675_vm0, %v974_v22 }
 0x20d   : > { %2130 = vmatpush3.bf16.xpose.msra.mxu1 %v995_v26  ;;  %2135 = vmatprep.mubr.msk.bf16.mxu1 %vm675_vm0, %v627_v57 }
 0x213   : > { %v976_v27 = vpop.permute.xlu0 %975 }
 0x214   : > { %v998_v31 = vsel %vm675_vm0, %v976_v27, 0  ;;  %2229 = vmatprep.subr.msk.bf16.mxu1 %vm675_vm0, %v976_v27 }
 0x215   : > { %2132 = vmatpush3.bf16.xpose.msra.mxu1 %v998_v31 }
 0x21b   : > { %v978_v35 = vpop.permute.xlu1 %977 }
 0x21c   : > { %v1001_v36 = vsel %vm675_vm0, %v978_v35, 0  ;;  %2230 = vmatprep.subr.msk.bf16.mxu1 %vm675_vm0, %v978_v35 }
 0x21d   : > { %2134 = vmatpush3.bf16.xpose.msra.mxu1 %v1001_v36 }
 0x21e   : > { %2143 = vmatprep.subr.bf16.mxu1 %v2766_v40 }
 0x224   : > { %2136 = vmatmul.mubr.msk.bf16.vlgmr.msra.gmra.mrb[24].mxu1 %vm675_vm0, %v3621_v41 }
 0x225   : > { %2139 = vmatprep.mubr.msk.bf16.mxu1 %vm675_vm0, %v3622_v47  ;;  %2144 = vmatpush3.bf16.msra.mxu1 %v2766_v40  ;;  %v1068_v40 = vlaneseq }
 0x226   : > { %2145 = vmatprep.subr.bf16.mxu1 %v2774_v49 }
 0x227   : > { %v2999_v48 = vshrl.u32 %v1068_v40, 7  ;;  %v3004_v56 = vand.u32 127, %v1068_v40 }
 0x229   : > { %2146 = vmatpush3.bf16.msra.mxu1 %v2774_v49  ;;  %v3002_v49 = vadd.s32 16, %v2999_v48  ;;  %v3007_v62 = vadd.s32 8, %v2999_v48  ;;  %vm1079_vm2 = vcmp.le.s32.totalorder %v3004_v56, %v2999_v48  ;;  %v3026_v21 = vadd.s32 48, %v2999_v48 }
 0x22a   : > { %2147 = vmatprep.subr.bf16.mxu1 %v2783_v58  ;;  %v3041_v42 = vadd.s32 32, %v2999_v48  ;;  %v3044_v43 = vadd.s32 56, %v2999_v48  ;;  %v3062_v32 = vadd.s32 40, %v2999_v48 }
 0x22b   : > { %vm1081_vm1 = vcmp.le.s32.totalorder %v3004_v56, %v3002_v49  ;;  %vm1080_vm3 = vcmp.le.s32.totalorder %v3004_v56, %v3007_v62  ;;  %vm1085_vm5 = vcmp.le.s32.totalorder %v3004_v56, %v3026_v21 }
 0x22c   : > { %2140 = vmatmul.mubr.msk.bf16.gmra.mrb[28].mxu1 %vm675_vm0, %v630_v37  ;;  %vm1083_vm6 = vcmp.le.s32.totalorder %v3004_v56, %v3041_v42  ;;  %vm1086_vm7 = vcmp.le.s32.totalorder %v3004_v56, %v3044_v43  ;;  %vm1084_vm8 = vcmp.le.s32.totalorder %v3004_v56, %v3062_v32 }
 0x22d   : > { %2148 = vmatpush3.bf16.msra.mxu1 %v2783_v58 }
 0x22e   : > { %2149 = vmatprep.subr.bf16.mxu1 %v2792_v3 }
 0x231   : > { %2150 = vmatpush3.bf16.msra.mxu1 %v2792_v3  ;;  %v3014_v3 = vadd.s32 24, %v2999_v48 }
 0x232   : > { %2175 = vmatprep.subr.bf16.mxu1 %v2829_v53 }
 0x233   : > { %vm1082_vm4 = vcmp.le.s32.totalorder %v3004_v56, %v3014_v3 }
 0x297   : > { %v2089_v58 = vpop.f32.mrb[0].mxu1 }
 0x298   : > { %v3019_v1 = vsel %vm1081_vm1, %v2089_v58, -inf  ;;  %v734_v7 = vpop.f32.mrb[1].mxu1 }
 0x299   : > { %v2090_v14 = vpop.f32.mrb[2].mxu1  ;;  %v1141_v15 = vsel %vm675_vm0, %v3019_v1, -inf  ;;  %v3031_v28 = vsel %vm1079_vm2, %v734_v7, -inf }
 0x29a   : > { %v737_v29 = vpop.f32.mrb[3].mxu1  ;;  %1142 = vmax.xlane.f32.xlu0 %v1141_v15  ;;  %v1135_v5 = vsel %vm675_vm0, %v3031_v28, -inf  ;;  %v3055_v10 = vsel %vm1082_vm4, %v2090_v14, -inf }
 0x29b   : > { %v3038_v34 = vsel %vm1080_vm3, %v737_v29, -inf  ;;  %v1144_v37 = vsel %vm675_vm0, %v3055_v10, -inf }
 0x29c   : > { %v1138_v57 = vsel %vm675_vm0, %v3038_v34, -inf }
 0x29d   : > { %1139 = vmax.xlane.f32.xlu1 %v1138_v57 }
 0x29e   : > { %1136 = vmax.xlane.f32.xlu0 %v1135_v5 }
 0x29f   : > { %v2093_v30 = vpop.f32.mrb[4].mxu1 }
 0x2a0   : > { %v3067_v12 = vsel %vm1085_vm5, %v2093_v30, -inf  ;;  %v750_v23 = vpop.f32.mrb[5].mxu1 }
 0x2a1   : > { %v2094_v25 = vpop.f32.mrb[6].mxu1  ;;  %v1153_v51 = vsel %vm675_vm0, %v3067_v12, -inf  ;;  %v3076_v61 = vsel %vm1083_vm6, %v750_v23, -inf }
 0x2a2   : > { %v3081_v60 = vsel %vm1086_vm7, %v2094_v25, -inf  ;;  %v753_v2 = vpop.f32.mrb[7].mxu1  ;;  %1145 = vmax.xlane.f32.xlu0 %v1144_v37  ;;  %1154 = vmax.xlane.f32.xlu1 %v1153_v51  ;;  %v1147_v24 = vsel %vm675_vm0, %v3076_v61, -inf }
 0x2a3   : > { %v1156_v11 = vsel %vm675_vm0, %v3081_v60, -inf  ;;  %v3092_v19 = vsel %vm1084_vm8, %v753_v2, -inf }
 0x2a4   : > { %v1150_v44 = vsel %vm675_vm0, %v3092_v19, -inf }
 0x2a6   : > { %1157 = vmax.xlane.f32.xlu0 %v1156_v11  ;;  %1148 = vmax.xlane.f32.xlu1 %v1147_v24 }
 0x2aa   : > { %1151 = vmax.xlane.f32.xlu0 %v1150_v44 }
 0x2b7   : > { %v2105_v45 = vpop.f32.mrb[8].mxu1 }
 0x2b8   : > { %v3099_v46 = vsel %vm1081_vm1, %v2105_v45, -inf  ;;  %v835_v50 = vpop.f32.mrb[9].mxu1 }
 0x2b9   : > { %v2106_v54 = vpop.f32.mrb[10].mxu1  ;;  %v1165_v55 = vsel %vm675_vm0, %v3099_v46, -inf  ;;  %v3106_v59 = vsel %vm1079_vm2, %v835_v50, -inf }
 0x2ba   : > { %v3111_v63 = vsel %vm1082_vm4, %v2106_v54, -inf  ;;  %v838_v0 = vpop.f32.mrb[11].mxu1  ;;  %1166 = vmax.xlane.f32.xlu1 %v1165_v55  ;;  %v1159_v9 = vsel %vm675_vm0, %v3106_v59, -inf }
 0x2bb   : > { %v1168_v4 = vsel %vm675_vm0, %v3111_v63, -inf  ;;  %v3118_v8 = vsel %vm1080_vm3, %v838_v0, -inf }
 0x2bc   : > { %1169 = vmax.xlane.f32.xlu0 %v1168_v4  ;;  %v1162_v17 = vsel %vm675_vm0, %v3118_v8, -inf }
 0x2be   : > { %1160 = vmax.xlane.f32.xlu1 %v1159_v9 }
 0x2bf   : > { %v2109_v13 = vpop.f32.mrb[12].mxu1 }
 0x2c0   : > { %v3127_v18 = vsel %vm1085_vm5, %v2109_v13, -inf  ;;  %v851_v22 = vpop.f32.mrb[13].mxu1  ;;  %1163 = vmax.xlane.f32.xlu0 %v1162_v17 }
 0x2c1   : > { %v2110_v26 = vpop.f32.mrb[14].mxu1  ;;  %v1177_v27 = vsel %vm675_vm0, %v3127_v18, -inf  ;;  %v3134_v31 = vsel %vm1083_vm6, %v851_v22, -inf }
 0x2c2   : > { %v3139_v35 = vsel %vm1086_vm7, %v2110_v26, -inf  ;;  %v854_v36 = vpop.f32.mrb[15].mxu1  ;;  %1178 = vmax.xlane.f32.xlu1 %v1177_v27  ;;  %v1171_v40 = vsel %vm675_vm0, %v3134_v31, -inf }
 0x2c3   : > { %v1180_v41 = vsel %vm675_vm0, %v3139_v35, -inf  ;;  %v3146_v47 = vsel %vm1084_vm8, %v854_v36, -inf }
 0x2c4   : > { %1181 = vmax.xlane.f32.xlu0 %v1180_v41  ;;  %v1174_v58 = vsel %vm675_vm0, %v3146_v47, -inf }
 0x2c6   : > { %1172 = vmax.xlane.f32.xlu1 %v1171_v40 }
 0x2c8   : > { %1175 = vmax.xlane.f32.xlu0 %v1174_v58 }
 0x2d7   : > { %v2121_v7 = vpop.f32.mrb[16].mxu1 }
 0x2d8   : > { %v3155_v14 = vsel %vm1081_vm1, %v2121_v7, -inf  ;;  %v936_v15 = vpop.f32.mrb[17].mxu1 }
 0x2d9   : > { %v2122_v29 = vpop.f32.mrb[18].mxu1  ;;  %v1189_v57 = vsel %vm675_vm0, %v3155_v14, -inf  ;;  %v3162_v5 = vsel %vm1079_vm2, %v936_v15, -inf }
 0x2da   : > { %v3167_v30 = vsel %vm1082_vm4, %v2122_v29, -inf  ;;  %v939_v23 = vpop.f32.mrb[19].mxu1  ;;  %1190 = vmax.xlane.f32.xlu1 %v1189_v57  ;;  %v1183_v51 = vsel %vm675_vm0, %v3162_v5, -inf }
 0x2db   : > { %v1192_v25 = vsel %vm675_vm0, %v3167_v30, -inf  ;;  %v3174_v37 = vsel %vm1080_vm3, %v939_v23, -inf }
 0x2dc   : > { %1193 = vmax.xlane.f32.xlu0 %v1192_v25  ;;  %v1186_v11 = vsel %vm675_vm0, %v3174_v37, -inf }
 0x2de   : > { %1184 = vmax.xlane.f32.xlu1 %v1183_v51 }
 0x2df   : > { %v2125_v2 = vpop.f32.mrb[20].mxu1 }
 0x2e0   : > { %v3183_v24 = vsel %vm1085_vm5, %v2125_v2, -inf  ;;  %v952_v44 = vpop.f32.mrb[21].mxu1  ;;  %1187 = vmax.xlane.f32.xlu0 %v1186_v11 }
 0x2e1   : > { %v2126_v45 = vpop.f32.mrb[22].mxu1  ;;  %v1201_v50 = vsel %vm675_vm0, %v3183_v24, -inf  ;;  %v3190_v54 = vsel %vm1083_vm6, %v952_v44, -inf }
 0x2e2   : > { %v3195_v55 = vsel %vm1086_vm7, %v2126_v45, -inf  ;;  %v955_v0 = vpop.f32.mrb[23].mxu1  ;;  %1202 = vmax.xlane.f32.xlu1 %v1201_v50  ;;  %v1195_v13 = vsel %vm675_vm0, %v3190_v54, -inf }
 0x2e3   : > { %v1204_v4 = vsel %vm675_vm0, %v3195_v55, -inf  ;;  %v3202_v9 = vsel %vm1084_vm8, %v955_v0, -inf }
 0x2e4   : > { %1205 = vmax.xlane.f32.xlu0 %v1204_v4  ;;  %v1198_v17 = vsel %vm675_vm0, %v3202_v9, -inf }
 0x2e6   : > { %1196 = vmax.xlane.f32.xlu1 %v1195_v13 }
 0x2e8   : > { %1199 = vmax.xlane.f32.xlu0 %v1198_v17 }
 0x2f7   : > { %v2137_v22 = vpop.f32.mrb[24].mxu1 }
 0x2f8   : > { %v3211_v26 = vsel %vm1081_vm1, %v2137_v22, -inf  ;;  %v1037_v27 = vpop.f32.mrb[25].mxu1 }
 0x2f9   : > { %v2138_v36 = vpop.f32.mrb[26].mxu1  ;;  %v1213_v41 = vsel %vm675_vm0, %v3211_v26, -inf  ;;  %v3218_v40 = vsel %vm1079_vm2, %v1037_v27, -inf }
 0x2fa   : > { %v3223_v58 = vsel %vm1082_vm4, %v2138_v36, -inf  ;;  %1214 = vmax.xlane.f32.xlu1 %v1213_v41  ;;  %v1040_v7 = vpop.f32.mrb[27].mxu1  ;;  %v1207_v48 = vsel %vm675_vm0, %v3218_v40, -inf }
 0x2fb   : > { %v1216_v49 = vsel %vm675_vm0, %v3223_v58, -inf  ;;  %v3230_v15 = vsel %vm1080_vm3, %v1040_v7, -inf }
 0x2fc   : > { %1217 = vmax.xlane.f32.xlu0 %v1216_v49  ;;  %v1210_v3 = vsel %vm675_vm0, %v3230_v15, -inf }
 0x2fe   : > { %1208 = vmax.xlane.f32.xlu1 %v1207_v48 }
 0x2ff   : > { %v2141_v29 = vpop.f32.mrb[28].mxu1 }
 0x300   : > { %1211 = vmax.xlane.f32.xlu0 %v1210_v3  ;;  %v1053_v57 = vpop.f32.mrb[29].mxu1  ;;  %v3246_v2 = vsel %vm1085_vm5, %v2141_v29, -inf }
 0x301   : > { %v3239_v23 = vsel %vm1083_vm6, %v1053_v57, -inf  ;;  %v2142_v25 = vpop.f32.mrb[30].mxu1  ;;  %v1225_v21 = vsel %vm675_vm0, %v3246_v2, -inf }
 0x302   : > { %v1056_v62 = vpop.f32.mrb[31].mxu1  ;;  %v1219_v51 = vsel %vm675_vm0, %v3239_v23, -inf  ;;  %v3258_v44 = vsel %vm1086_vm7, %v2142_v25, -inf }
 0x303   : > { %v3251_v11 = vsel %vm1084_vm8, %v1056_v62, -inf  ;;  %1220 = vmax.xlane.f32.xlu1 %v1219_v51  ;;  %v1228_v45 = vsel %vm675_vm0, %v3258_v44, -inf }
 0x304   : > { %v1222_v42 = vsel %vm675_vm0, %v3251_v11, -inf }
 0x305   : > { %1223 = vmax.xlane.f32.xlu0 %v1222_v42 }
 0x307   : > { %1226 = vmax.xlane.f32.xlu1 %v1225_v21 }
 0x309   : > { %1229 = vmax.xlane.f32.xlu0 %v1228_v45 }
 0x327   : > { %v1143_v32 = vpop.xlane.xlu0 %1142 }
 0x328   : > { %v1233_v50 = vsub.f32 %v3019_v1, %v1143_v32 }
 0x32a   : > { %v1267_v0 = vmul.f32 1.442695, %v1233_v50  ;;  %v1140_v4 = vpop.xlane.xlu1 %1139 }
 0x32b   : > { %v1137_v13 = vpop.xlane.xlu0 %1136  ;;  %v1232_v43 = vsub.f32 %v3038_v34, %v1140_v4 }
 0x32c   : > { %2323 = vpow2.f32 %v1267_v0  ;;  %v1231_v56 = vsub.f32 %v3031_v28, %v1137_v13 }
 0x32d   : > { %v1265_v7 = vmul.f32 1.442695, %v1232_v43 }
 0x32e   : > { %v1263_v17 = vmul.f32 1.442695, %v1231_v56 }
 0x32f   : > { %v1146_v22 = vpop.xlane.xlu0 %1145  ;;  %v1155_v27 = vpop.xlane.xlu1 %1154 }
 0x330   : > { %2325 = vpow2.f32 %v1263_v17  ;;  %v1234_v36 = vsub.f32 %v3055_v10, %v1146_v22  ;;  %v1237_v41 = vsub.f32 %v3067_v12, %v1155_v27 }
 0x332   : > { %v1269_v49 = vmul.f32 1.442695, %v1234_v36  ;;  %v1275_v48 = vmul.f32 1.442695, %v1237_v41 }
 0x333   : > { %v1158_v1 = vpop.xlane.xlu0 %1157  ;;  %v1149_v29 = vpop.xlane.xlu1 %1148 }
 0x334   : > { %2327 = vpow2.f32 %v1269_v49  ;;  %v1238_v3 = vsub.f32 %v3081_v60, %v1158_v1  ;;  %v1235_v28 = vsub.f32 %v3076_v61, %v1149_v29 }
 0x335   : > { %2329 = vpow2.f32 %v1275_v48 }
 0x336   : > { %v3271_v34 = vpop.eup %2323  ;;  %2331 = vpow2.f32 %v1265_v7  ;;  %v1277_v57 = vmul.f32 1.442695, %v1238_v3  ;;  %v1271_v25 = vmul.f32 1.442695, %v1235_v28 }
 0x337   : > { %v1152_v62 = vpop.xlane.xlu0 %1151  ;;  %v1333_v10 = vsel %vm675_vm0, %v3271_v34, 0.0 }
 0x338   : > { %v1236_v12 = vsub.f32 %v3092_v19, %v1152_v62  ;;  %1334 = vadd.xlane.f32.xlu1 %v1333_v10  ;;  %2333 = vpow2.f32 %v1271_v25 }
 0x339   : > { %2335 = vpow2.f32 %v1277_v57 }
 0x33a   : > { %v3276_v51 = vpop.eup %2325  ;;  %v1273_v60 = vmul.f32 1.442695, %v1236_v12 }
 0x33b   : > { %v1327_v61 = vsel %vm675_vm0, %v3276_v51, 0.0 }
 0x33c   : > { %1328 = vadd.xlane.f32.xlu1 %v1327_v61  ;;  %2337 = vpow2.f32 %v1273_v60 }
 0x33e   : > { %v3280_v42 = vpop.eup %2327 }
 0x33f   : > { %v3282_v21 = vpop.eup %2329  ;;  %v1336_v45 = vsel %vm675_vm0, %v3280_v42, 0.0 }
 0x340   : > { %v3286_v32 = vpop.eup %2331  ;;  %v1345_v19 = vsel %vm675_vm0, %v3282_v21, 0.0  ;;  %1337 = vadd.xlane.f32.xlu0 %v1336_v45 }
 0x341   : > { %1346 = vadd.xlane.f32.xlu1 %v1345_v19  ;;  %v1330_v0 = vsel %vm675_vm0, %v3286_v32, 0.0 }
 0x342   : > { %v3290_v50 = vpop.eup %2333 }
 0x343   : > { %v3294_v4 = vpop.eup %2335  ;;  %v1339_v13 = vsel %vm675_vm0, %v3290_v50, 0.0 }
 0x344   : > { %1331 = vadd.xlane.f32.xlu0 %v1330_v0  ;;  %v1348_v43 = vsel %vm675_vm0, %v3294_v4, 0.0 }
 0x345   : > { %1340 = vadd.xlane.f32.xlu1 %v1339_v13 }
 0x346   : > { %v3300_v17 = vpop.eup %2337 }
 0x347   : > { %v1167_v56 = vpop.xlane.xlu1 %1166  ;;  %v1342_v49 = vsel %vm675_vm0, %v3300_v17, 0.0 }
 0x348   : > { %v1241_v22 = vsub.f32 %v3099_v46, %v1167_v56  ;;  %1349 = vadd.xlane.f32.xlu0 %v1348_v43 }
 0x349   : > { %v1170_v27 = vpop.xlane.xlu0 %1169 }
 0x34a   : > { %v1283_v36 = vmul.f32 1.442695, %v1241_v22  ;;  %v1242_v41 = vsub.f32 %v3111_v63, %v1170_v27 }
 0x34b   : > { %v1161_v7 = vpop.xlane.xlu1 %1160 }
 0x34c   : > { %2339 = vpow2.f32 %v1283_v36  ;;  %v1285_v48 = vmul.f32 1.442695, %v1242_v41  ;;  %v1239_v1 = vsub.f32 %v3106_v59, %v1161_v7  ;;  %1343 = vadd.xlane.f32.xlu0 %v1342_v49 }
 0x34d   : > { %v1164_v29 = vpop.xlane.xlu0 %1163 }
 0x34e   : > { %2341 = vpow2.f32 %v1285_v48  ;;  %v1279_v3 = vmul.f32 1.442695, %v1239_v1  ;;  %v1240_v28 = vsub.f32 %v3118_v8, %v1164_v29 }
 0x34f   : > { %v1179_v46 = vpop.xlane.xlu1 %1178 }
 0x350   : > { %2343 = vpow2.f32 %v1279_v3  ;;  %v1281_v57 = vmul.f32 1.442695, %v1240_v28  ;;  %v1245_v25 = vsub.f32 %v3127_v18, %v1179_v46 }
 0x351   : > { %v1182_v63 = vpop.xlane.xlu0 %1181 }
 0x352   : > { %2345 = vpow2.f32 %v1281_v57  ;;  %v1291_v62 = vmul.f32 1.442695, %v1245_v25  ;;  %v1246_v10 = vsub.f32 %v3139_v35, %v1182_v63 }
 0x353   : > { %v1173_v12 = vpop.xlane.xlu1 %1172 }
 0x354   : > { %2347 = vpow2.f32 %v1291_v62  ;;  %v1293_v60 = vmul.f32 1.442695, %v1246_v10  ;;  %v1243_v59 = vsub.f32 %v3134_v31, %v1173_v12 }
 0x355   : > { %v1176_v61 = vpop.xlane.xlu0 %1175 }
 0x356   : > { %v3311_v45 = vpop.eup %2339  ;;  %2349 = vpow2.f32 %v1293_v60  ;;  %v1287_v8 = vmul.f32 1.442695, %v1243_v59  ;;  %v1244_v19 = vsub.f32 %v3146_v47, %v1176_v61 }
 0x357   : > { %v1357_v18 = vsel %vm675_vm0, %v3311_v45, 0.0 }
 0x358   : > { %v3316_v0 = vpop.eup %2341  ;;  %2351 = vpow2.f32 %v1287_v8  ;;  %v1289_v13 = vmul.f32 1.442695, %v1244_v19  ;;  %1358 = vadd.xlane.f32.xlu1 %v1357_v18 }
 0x359   : > { %v1360_v35 = vsel %vm675_vm0, %v3316_v0, 0.0 }
 0x35a   : > { %v3320_v56 = vpop.eup %2343  ;;  %2353 = vpow2.f32 %v1289_v13  ;;  %1361 = vadd.xlane.f32.xlu0 %v1360_v35 }
 0x35b   : > { %v1351_v31 = vsel %vm675_vm0, %v3320_v56, 0.0 }
 0x35c   : > { %v3324_v43 = vpop.eup %2345  ;;  %1352 = vadd.xlane.f32.xlu1 %v1351_v31 }
 0x35d   : > { %v1354_v47 = vsel %vm675_vm0, %v3324_v43, 0.0 }
 0x35e   : > { %v3328_v22 = vpop.eup %2347  ;;  %1355 = vadd.xlane.f32.xlu0 %v1354_v47 }
 0x35f   : > { %v1369_v27 = vsel %vm675_vm0, %v3328_v22, 0.0 }
 0x360   : > { %v3332_v36 = vpop.eup %2349  ;;  %1370 = vadd.xlane.f32.xlu1 %v1369_v27 }
 0x361   : > { %v1372_v41 = vsel %vm675_vm0, %v3332_v36, 0.0 }
 0x362   : > { %v3336_v7 = vpop.eup %2351  ;;  %1373 = vadd.xlane.f32.xlu0 %v1372_v41 }
 0x363   : > { %v1363_v49 = vsel %vm675_vm0, %v3336_v7, 0.0 }
 0x364   : > { %v3340_v48 = vpop.eup %2353  ;;  %1364 = vadd.xlane.f32.xlu1 %v1363_v49 }
 0x365   : > { %v1366_v1 = vsel %vm675_vm0, %v3340_v48, 0.0 }
 0x366   : > { %1367 = vadd.xlane.f32.xlu0 %v1366_v1 }
 0x367   : > { %v1191_v29 = vpop.xlane.xlu1 %1190 }
 0x368   : > { %v1249_v3 = vsub.f32 %v3155_v14, %v1191_v29 }
 0x369   : > { %v1194_v28 = vpop.xlane.xlu0 %1193 }
 0x36a   : > { %v1299_v46 = vmul.f32 1.442695, %v1249_v3  ;;  %v1250_v57 = vsub.f32 %v3167_v30, %v1194_v28 }
 0x36b   : > { %v1185_v25 = vpop.xlane.xlu1 %1184 }
 0x36c   : > { %2355 = vpow2.f32 %v1299_v46  ;;  %v1301_v63 = vmul.f32 1.442695, %v1250_v57  ;;  %v1247_v62 = vsub.f32 %v3162_v5, %v1185_v25 }
 0x36d   : > { %v1188_v10 = vpop.xlane.xlu0 %1187 }
 0x36e   : > { %2357 = vpow2.f32 %v1301_v63  ;;  %v1295_v12 = vmul.f32 1.442695, %v1247_v62  ;;  %v1248_v60 = vsub.f32 %v3174_v37, %v1188_v10 }
 0x36f   : > { %v1203_v59 = vpop.xlane.xlu1 %1202 }
 0x370   : > { %2359 = vpow2.f32 %v1295_v12  ;;  %v1297_v61 = vmul.f32 1.442695, %v1248_v60  ;;  %v1253_v8 = vsub.f32 %v3183_v24, %v1203_v59 }
 0x371   : > { %v1206_v14 = vpop.xlane.xlu0 %1205 }
 0x372   : > { %2361 = vpow2.f32 %v1297_v61  ;;  %v1307_v19 = vmul.f32 1.442695, %v1253_v8  ;;  %v1254_v30 = vsub.f32 %v3195_v55, %v1206_v14 }
 0x373   : > { %v1197_v18 = vpop.xlane.xlu1 %1196 }
 0x374   : > { %2363 = vpow2.f32 %v1307_v19  ;;  %v1309_v13 = vmul.f32 1.442695, %v1254_v30  ;;  %v1251_v5 = vsub.f32 %v3190_v54, %v1197_v18 }
 0x375   : > { %v1200_v35 = vpop.xlane.xlu0 %1199 }
 0x376   : > { %v3351_v31 = vpop.eup %2355  ;;  %2365 = vpow2.f32 %v1309_v13  ;;  %v1303_v37 = vmul.f32 1.442695, %v1251_v5  ;;  %v1252_v47 = vsub.f32 %v3202_v9, %v1200_v35 }
 0x377   : > { %v1381_v24 = vsel %vm675_vm0, %v3351_v31, 0.0 }
 0x378   : > { %v3356_v27 = vpop.eup %2357  ;;  %2367 = vpow2.f32 %v1303_v37  ;;  %v1305_v41 = vmul.f32 1.442695, %v1252_v47  ;;  %1382 = vadd.xlane.f32.xlu1 %v1381_v24 }
 0x379   : > { %v1384_v55 = vsel %vm675_vm0, %v3356_v27, 0.0 }
 0x37a   : > { %v3360_v49 = vpop.eup %2359  ;;  %2369 = vpow2.f32 %v1305_v41  ;;  %1385 = vadd.xlane.f32.xlu0 %v1384_v55 }
 0x37b   : > { %v1375_v54 = vsel %vm675_vm0, %v3360_v49, 0.0 }
 0x37c   : > { %v3364_v1 = vpop.eup %2361  ;;  %1376 = vadd.xlane.f32.xlu1 %v1375_v54 }
 0x37d   : > { %v1378_v9 = vsel %vm675_vm0, %v3364_v1, 0.0 }
 0x37e   : > { %v3368_v29 = vpop.eup %2363  ;;  %1379 = vadd.xlane.f32.xlu0 %v1378_v9 }
 0x37f   : > { %v1393_v3 = vsel %vm675_vm0, %v3368_v29, 0.0 }
 0x380   : > { %v3372_v28 = vpop.eup %2365  ;;  %1394 = vadd.xlane.f32.xlu1 %v1393_v3 }
 0x381   : > { %v1396_v46 = vsel %vm675_vm0, %v3372_v28, 0.0 }
 0x382   : > { %v3376_v57 = vpop.eup %2367  ;;  %1397 = vadd.xlane.f32.xlu0 %v1396_v46 }
 0x383   : > { %v1387_v25 = vsel %vm675_vm0, %v3376_v57, 0.0 }
 0x384   : > { %v3380_v63 = vpop.eup %2369  ;;  %1388 = vadd.xlane.f32.xlu1 %v1387_v25 }
 0x385   : > { %v1390_v62 = vsel %vm675_vm0, %v3380_v63, 0.0 }
 0x386   : > { %1391 = vadd.xlane.f32.xlu0 %v1390_v62 }
 0x387   : > { %v1215_v10 = vpop.xlane.xlu1 %1214 }
 0x388   : > { %v1257_v12 = vsub.f32 %v3211_v26, %v1215_v10 }
 0x389   : > { %v1218_v60 = vpop.xlane.xlu0 %1217 }
 0x38a   : > { %v1315_v59 = vmul.f32 1.442695, %v1257_v12  ;;  %v1258_v61 = vsub.f32 %v3223_v58, %v1218_v60 }
 0x38b   : > { %v1209_v8 = vpop.xlane.xlu1 %1208 }
 0x38c   : > { %2371 = vpow2.f32 %v1315_v59  ;;  %v1317_v14 = vmul.f32 1.442695, %v1258_v61  ;;  %v1255_v19 = vsub.f32 %v3218_v40, %v1209_v8 }
 0x38d   : > { %v1212_v30 = vpop.xlane.xlu0 %1211 }
 0x38e   : > { %2373 = vpow2.f32 %v1317_v14  ;;  %v1311_v18 = vmul.f32 1.442695, %v1255_v19  ;;  %v1256_v13 = vsub.f32 %v3230_v15, %v1212_v30 }
 0x390   : > { %2375 = vpow2.f32 %v1311_v18  ;;  %v1313_v5 = vmul.f32 1.442695, %v1256_v13  ;;  %v1221_v35 = vpop.xlane.xlu1 %1220 }
 0x391   : > { %v1259_v37 = vsub.f32 %v3239_v23, %v1221_v35 }
 0x392   : > { %2377 = vpow2.f32 %v1313_v5  ;;  %v1224_v26 = vpop.xlane.xlu0 %1223 }
 0x393   : > { %v1319_v47 = vmul.f32 1.442695, %v1259_v37  ;;  %v1260_v58 = vsub.f32 %v3251_v11, %v1224_v26 }
 0x394   : > { %v1227_v24 = vpop.xlane.xlu1 %1226 }
 0x395   : > { %2379 = vpow2.f32 %v1319_v47  ;;  %v1321_v41 = vmul.f32 1.442695, %v1260_v58  ;;  %v1261_v40 = vsub.f32 %v3246_v2, %v1227_v24 }
 0x396   : > { %v3391_v55 = vpop.eup %2371  ;;  %v1230_v54 = vpop.xlane.xlu0 %1229 }
 0x397   : > { %2381 = vpow2.f32 %v1321_v41  ;;  %v1323_v15 = vmul.f32 1.442695, %v1261_v40  ;;  %v1262_v9 = vsub.f32 %v3258_v44, %v1230_v54  ;;  %v1405_v23 = vsel %vm675_vm0, %v3391_v55, 0.0 }
 0x398   : > { %v3396_v3 = vpop.eup %2373  ;;  %1406 = vadd.xlane.f32.xlu1 %v1405_v23 }
 0x399   : > { %2383 = vpow2.f32 %v1323_v15  ;;  %v1325_v11 = vmul.f32 1.442695, %v1262_v9  ;;  %v1408_v46 = vsel %vm675_vm0, %v3396_v3, 0.0 }
 0x39a   : > { %v3400_v25 = vpop.eup %2375  ;;  %1409 = vadd.xlane.f32.xlu0 %v1408_v46 }
 0x39b   : > { %2385 = vpow2.f32 %v1325_v11  ;;  %v1399_v2 = vsel %vm675_vm0, %v3400_v25, 0.0 }
 0x39c   : > { %v3404_v62 = vpop.eup %2377  ;;  %1400 = vadd.xlane.f32.xlu1 %v1399_v2 }
 0x39d   : > { %v1402_v44 = vsel %vm675_vm0, %v3404_v62, 0.0 }
 0x39e   : > { %1403 = vadd.xlane.f32.xlu0 %v1402_v44 }
 0x39f   : > { %v3408_v10 = vpop.eup %2379 }
 0x3a0   : > { %v1411_v12 = vsel %vm675_vm0, %v3408_v10, 0.0 }
 0x3a1   : > { %v3412_v60 = vpop.eup %2381  ;;  %1412 = vadd.xlane.f32.xlu1 %v1411_v12 }
 0x3a2   : > { %v1414_v59 = vsel %vm675_vm0, %v3412_v60, 0.0 }
 0x3a3   : > { %v3416_v61 = vpop.eup %2383  ;;  %1415 = vadd.xlane.f32.xlu0 %v1414_v59 }
 0x3a4   : > { %v1417_v8 = vsel %vm675_vm0, %v3416_v61, 0.0 }
 0x3a5   : > { %v3420_v14 = vpop.eup %2385  ;;  %1418 = vadd.xlane.f32.xlu1 %v1417_v8 }
 0x3a6   : > { %v1420_v19 = vsel %vm675_vm0, %v3420_v14, 0.0 }
 0x3a7   : > { %1421 = vadd.xlane.f32.xlu0 %v1420_v19 }
 0x3c5   : > { %v1335_v30 = vpop.xlane.xlu1 %1334 }
 0x3c9   : > { %v1329_v18 = vpop.xlane.xlu1 %1328 }
 0x3cd   : > { %v1338_v13 = vpop.xlane.xlu0 %1337 }
 0x3ce   : > { %v1347_v5 = vpop.xlane.xlu1 %1346  ;;  %2387 = vrcp.f32 %v1338_v13 }
 0x3cf   : > { %2389 = vrcp.f32 %v1329_v18 }
 0x3d0   : > { %2391 = vrcp.f32 %v1335_v30 }
 0x3d1   : > { %v1332_v35 = vpop.xlane.xlu0 %1331 }
 0x3d2   : > { %2393 = vrcp.f32 %v1332_v35  ;;  %v1341_v37 = vpop.xlane.xlu1 %1340 }
 0x3d5   : > { %v1350_v26 = vpop.xlane.xlu0 %1349 }
 0x3d6   : > { %2395 = vrcp.f32 %v1350_v26 }
 0x3d7   : > { %2397 = vrcp.f32 %v1341_v37 }
 0x3d8   : > { %v2388_v47 = vpop.eup %2387  ;;  %2399 = vrcp.f32 %v1347_v5 }
 0x3d9   : > { %v1344_v58 = vpop.xlane.xlu0 %1343  ;;  %v2390_v24 = vpop.eup %2389  ;;  %v1458_v54 = vmul.f32 %v2388_v47, %v3280_v42 }
 0x3da   : > { %2401 = vrcp.f32 %v1344_v58  ;;  %v2392_v41 = vpop.eup %2391  ;;  %v1455_v15 = vmul.f32 %v2390_v24, %v3276_v51 }
 0x3db   : > { %v1457_v23 = vmul.f32 %v2392_v41, %v3271_v34 }
 0x3dc   : > { %v2394_v40 = vpop.eup %2393 }
 0x3dd   : > { %v1456_v9 = vmul.f32 %v2394_v40, %v3286_v32  ;;  %v1488_v46 = vpack.c.bf16 %v1458_v54, %v1457_v23 }
 0x3df   : > { %v1487_v11 = vpack.c.bf16 %v1456_v9, %v1455_v15 }
 0x3e0   : > { %v2396_v2 = vpop.eup %2395 }
 0x3e1   : > { %2151 = vmatprep.mubr.msk.bf16.mxu1 %vm675_vm0, %v1487_v11  ;;  %v2398_v44 = vpop.eup %2397  ;;  %v1462_v51 = vmul.f32 %v2396_v2, %v3294_v4 }
 0x3e2   : > { %2152 = vmatmul.mubr.msk.bf16.vlgmr.msra.gmra.mrb[32].mxu1 %vm675_vm0, %v1488_v46  ;;  %v2400_v12 = vpop.eup %2399  ;;  %v1459_v32 = vmul.f32 %v2398_v44, %v3290_v50 }
 0x3e3   : > { %2176 = vmatpush3.bf16.msra.mxu1 %v2829_v53  ;;  %v1461_v8 = vmul.f32 %v2400_v12, %v3282_v21 }
 0x3e4   : > { %v2402_v59 = vpop.eup %2401  ;;  %2177 = vmatprep.subr.bf16.mxu1 %v2838_v6 }
 0x3e5   : > { %v1359_v42 = vpop.xlane.xlu1 %1358  ;;  %v1460_v34 = vmul.f32 %v2402_v59, %v3300_v17  ;;  %v1490_v18 = vpack.c.bf16 %v1462_v51, %v1461_v8 }
 0x3e7   : > { %2178 = vmatpush3.bf16.msra.mxu1 %v2838_v6  ;;  %v1362_v19 = vpop.xlane.xlu0 %1361  ;;  %v1489_v30 = vpack.c.bf16 %v1460_v34, %v1459_v32 }
 0x3e8   : > { %2179 = vmatprep.subr.bf16.mxu1 %v2847_v20  ;;  %2403 = vrcp.f32 %v1362_v19 }
 0x3e9   : > { %v1353_v53 = vpop.xlane.xlu1 %1352  ;;  %2155 = vmatprep.mubr.msk.bf16.mxu1 %vm675_vm0, %v1489_v30 }
 0x3ea   : > { %2405 = vrcp.f32 %v1353_v53  ;;  %2156 = vmatmul.mubr.msk.bf16.gmra.mrb[36].mxu1 %vm675_vm0, %v1490_v18 }
 0x3eb   : > { %2407 = vrcp.f32 %v1359_v42  ;;  %2180 = vmatpush3.bf16.msra.mxu1 %v2847_v20  ;;  %v1356_v50 = vpop.xlane.xlu0 %1355 }
 0x3ec   : > { %2181 = vmatprep.subr.bf16.mxu1 %v2856_v33  ;;  %2409 = vrcp.f32 %v1356_v50 }
 0x3ed   : > { %v1371_v6 = vpop.xlane.xlu1 %1370 }
 0x3ef   : > { %2182 = vmatpush3.bf16.msra.mxu1 %v2856_v33  ;;  %v1374_v21 = vpop.xlane.xlu0 %1373 }
 0x3f0   : > { %2207 = vmatprep.subr.bf16.mxu1 %v2865_v52  ;;  %2411 = vrcp.f32 %v1374_v21 }
 0x3f1   : > { %v1365_v4 = vpop.xlane.xlu1 %1364 }
 0x3f2   : > { %2413 = vrcp.f32 %v1365_v4  ;;  %v2404_v17 = vpop.eup %2403 }
 0x3f3   : > { %2415 = vrcp.f32 %v1371_v6  ;;  %v1368_v13 = vpop.xlane.xlu0 %1367  ;;  %v1466_v37 = vmul.f32 %v2404_v17, %v3316_v0 }
 0x3f4   : > { %v2406_v5 = vpop.eup %2405  ;;  %2417 = vrcp.f32 %v1368_v13 }
 0x3f5   : > { %v2408_v35 = vpop.eup %2407  ;;  %v1463_v26 = vmul.f32 %v2406_v5, %v3320_v56 }
 0x3f6   : > { %v2410_v20 = vpop.eup %2409  ;;  %v1465_v33 = vmul.f32 %v2408_v35, %v3311_v45 }
 0x3f7   : > { %v1464_v47 = vmul.f32 %v2410_v20, %v3324_v43 }
 0x3f8   : > { %v1492_v24 = vpack.c.bf16 %v1466_v37, %v1465_v33 }
 0x3f9   : > { %v1491_v58 = vpack.c.bf16 %v1464_v47, %v1463_v26 }
 0x3fa   : > { %v2412_v41 = vpop.eup %2411 }
 0x3fb   : > { %2167 = vmatprep.mubr.msk.bf16.mxu0 %vm675_vm0, %v1491_v58  ;;  %v1470_v0 = vmul.f32 %v2412_v41, %v3332_v36 }
 0x3fc   : > { %v2414_v40 = vpop.eup %2413  ;;  %2168 = vmatmul.mubr.msk.bf16.vlgmr.msra.gmra.mrb[64].mxu0 %vm675_vm0, %v1492_v24 }
 0x3fd   : > { %v2416_v54 = vpop.eup %2415  ;;  %2192 = vmatpush3.bf16.msra.mxu0 %v2865_v52  ;;  %v1467_v56 = vmul.f32 %v2414_v40, %v3336_v7 }
 0x3fe   : > { %v2418_v15 = vpop.eup %2417  ;;  %2193 = vmatprep.subr.bf16.mxu0 %v2875_v16  ;;  %v1469_v43 = vmul.f32 %v2416_v54, %v3328_v22 }
 0x3ff   : > { %v1468_v45 = vmul.f32 %v2418_v15, %v3340_v48 }
 0x400   : > { %v1494_v23 = vpack.c.bf16 %v1470_v0, %v1469_v43 }
 0x401   : > { %2194 = vmatpush3.bf16.msra.mxu0 %v2875_v16  ;;  %v1493_v9 = vpack.c.bf16 %v1468_v45, %v1467_v56 }
 0x402   : > { %2195 = vmatprep.subr.bf16.mxu0 %v2884_v39 }
 0x403   : > { %2171 = vmatprep.mubr.msk.bf16.mxu0 %vm675_vm0, %v1493_v9 }
 0x404   : > { %2172 = vmatmul.mubr.msk.bf16.gmra.mrb[68].mxu0 %vm675_vm0, %v1494_v23 }
 0x405   : > { %2196 = vmatpush3.bf16.msra.mxu0 %v2884_v39  ;;  %v1383_v11 = vpop.xlane.xlu1 %1382 }
 0x406   : > { %2197 = vmatprep.subr.bf16.mxu0 %v2895_v38 }
 0x407   : > { %v1386_v36 = vpop.xlane.xlu0 %1385 }
 0x408   : > { %2419 = vrcp.f32 %v1386_v36 }
 0x409   : > { %2198 = vmatpush3.bf16.msra.mxu0 %v2895_v38  ;;  %v1377_v22 = vpop.xlane.xlu1 %1376 }
 0x40a   : > { %2421 = vrcp.f32 %v1377_v22 }
 0x40b   : > { %2423 = vrcp.f32 %v1383_v11  ;;  %v1380_v7 = vpop.xlane.xlu0 %1379 }
 0x40c   : > { %2425 = vrcp.f32 %v1380_v7 }
 0x40d   : > { %v1395_v48 = vpop.xlane.xlu1 %1394 }
 0x40f   : > { %v1398_v46 = vpop.xlane.xlu0 %1397 }
 0x410   : > { %2427 = vrcp.f32 %v1398_v46 }
 0x411   : > { %v1389_v2 = vpop.xlane.xlu1 %1388 }
 0x412   : > { %2429 = vrcp.f32 %v1389_v2  ;;  %v2420_v44 = vpop.eup %2419 }
 0x413   : > { %2431 = vrcp.f32 %v1395_v48  ;;  %v1392_v12 = vpop.xlane.xlu0 %1391  ;;  %v1474_v32 = vmul.f32 %v2420_v44, %v3356_v27 }
 0x414   : > { %v2422_v59 = vpop.eup %2421  ;;  %2433 = vrcp.f32 %v1392_v12 }
 0x415   : > { %v2424_v51 = vpop.eup %2423  ;;  %v1471_v34 = vmul.f32 %v2422_v59, %v3360_v49 }
 0x416   : > { %v2426_v42 = vpop.eup %2425  ;;  %v1473_v19 = vmul.f32 %v2424_v51, %v3351_v31 }
 0x417   : > { %v1472_v8 = vmul.f32 %v2426_v42, %v3364_v1 }
 0x418   : > { %v1496_v18 = vpack.c.bf16 %v1474_v32, %v1473_v19 }
 0x419   : > { %v1495_v30 = vpack.c.bf16 %v1472_v8, %v1471_v34 }
 0x41a   : > { %v2428_v53 = vpop.eup %2427 }
 0x41b   : > { %2183 = vmatprep.mubr.msk.bf16.mxu1 %vm675_vm0, %v1495_v30  ;;  %v1478_v27 = vmul.f32 %v2428_v53, %v3372_v28 }
 0x41c   : > { %v2430_v50 = vpop.eup %2429  ;;  %2184 = vmatmul.mubr.msk.bf16.vlgmr.msra.gmra.mrb[40].mxu1 %vm675_vm0, %v1496_v18 }
 0x41d   : > { %v2432_v6 = vpop.eup %2431  ;;  %2211 = vmatpush3.bf16.msra.mxu1 %v2865_v52  ;;  %v1475_v49 = vmul.f32 %v2430_v50, %v3376_v57 }
 0x41e   : > { %v2434_v21 = vpop.eup %2433  ;;  %2208 = vmatprep.subr.bf16.mxu1 %v2875_v16  ;;  %v1477_v1 = vmul.f32 %v2432_v6, %v3368_v29 }
 0x41f   : > { %v1476_v31 = vmul.f32 %v2434_v21, %v3380_v63 }
 0x420   : > { %v1498_v17 = vpack.c.bf16 %v1478_v27, %v1477_v1 }
 0x421   : > { %2212 = vmatpush3.bf16.msra.mxu1 %v2875_v16  ;;  %v1497_v4 = vpack.c.bf16 %v1476_v31, %v1475_v49 }
 0x422   : > { %2209 = vmatprep.subr.bf16.mxu1 %v2884_v39 }
 0x423   : > { %2187 = vmatprep.mubr.msk.bf16.mxu1 %vm675_vm0, %v1497_v4 }
 0x424   : > { %2188 = vmatmul.mubr.msk.bf16.gmra.mrb[44].mxu1 %vm675_vm0, %v1498_v17 }
 0x425   : > { %2213 = vmatpush3.bf16.msra.mxu1 %v2884_v39  ;;  %v1407_v52 = vpop.xlane.xlu1 %1406 }
 0x426   : > { %2210 = vmatprep.subr.bf16.mxu1 %v2895_v38 }
 0x427   : > { %v1410_v28 = vpop.xlane.xlu0 %1409 }
 0x428   : > { %2435 = vrcp.f32 %v1410_v28 }
 0x429   : > { %2214 = vmatpush3.bf16.msra.mxu1 %v2895_v38  ;;  %v1401_v29 = vpop.xlane.xlu1 %1400 }
 0x42a   : > { %2437 = vrcp.f32 %v1401_v29 }
 0x42b   : > { %2439 = vrcp.f32 %v1407_v52  ;;  %v1404_v16 = vpop.xlane.xlu0 %1403 }
 0x42c   : > { %2441 = vrcp.f32 %v1404_v16 }
 0x42e   : > { %v1413_v57 = vpop.xlane.xlu1 %1412 }
 0x42f   : > { %2443 = vrcp.f32 %v1413_v57 }
 0x430   : > { %v1416_v63 = vpop.xlane.xlu0 %1415 }
 0x431   : > { %2445 = vrcp.f32 %v1416_v63 }
 0x432   : > { %v1419_v13 = vpop.xlane.xlu1 %1418  ;;  %v2436_v5 = vpop.eup %2435 }
 0x433   : > { %2447 = vrcp.f32 %v1419_v13  ;;  %v1482_v26 = vmul.f32 %v2436_v5, %v3396_v3 }
 0x434   : > { %v2438_v39 = vpop.eup %2437  ;;  %v1422_v35 = vpop.xlane.xlu0 %1421 }
 0x435   : > { %v2440_v20 = vpop.eup %2439  ;;  %2449 = vrcp.f32 %v1422_v35  ;;  %v1479_v38 = vmul.f32 %v2438_v39, %v3400_v25 }
 0x436   : > { %v2442_v37 = vpop.eup %2441  ;;  %v1481_v33 = vmul.f32 %v2440_v20, %v3391_v55 }
 0x437   : > { %v1480_v47 = vmul.f32 %v2442_v37, %v3404_v62 }
 0x438   : > { %v1500_v41 = vpack.c.bf16 %v1482_v26, %v1481_v33 }
 0x439   : > { %v2444_v58 = vpop.eup %2443  ;;  %v1499_v24 = vpack.c.bf16 %v1480_v47, %v1479_v38 }
 0x43a   : > { %v1483_v54 = vmul.f32 %v2444_v58, %v3408_v10 }
 0x43b   : > { %v2446_v40 = vpop.eup %2445  ;;  %2199 = vmatprep.mubr.msk.bf16.mxu0 %vm675_vm0, %v1499_v24 }
 0x43c   : > { %2200 = vmatmul.mubr.msk.bf16.vlgmr.msra.gmra.mrb[72].mxu0 %vm675_vm0, %v1500_v41  ;;  %v1484_v15 = vmul.f32 %v2446_v40, %v3412_v60 }
 0x43d   : > { %v2448_v3 = vpop.eup %2447 }
 0x43e   : > { %v1501_v0 = vpack.c.bf16 %v1484_v15, %v1483_v54  ;;  %v1485_v62 = vmul.f32 %v2448_v3, %v3416_v61 }
 0x43f   : > { %v2450_v25 = vpop.eup %2449 }
 0x440   : > { %v1486_v55 = vmul.f32 %v2450_v25, %v3420_v14  ;;  %2203 = vmatprep.mubr.msk.bf16.mxu1 %vm675_vm0, %v1501_v0 }
 0x442   : > { %v1502_v56 = vpack.c.bf16 %v1486_v55, %v1485_v62 }
 0x444   : > { %2204 = vmatmul.mubr.msk.bf16.vlgmr.msra.gmra.mrb[48].mxu1 %vm675_vm0, %v1502_v56 }
 0x4b5   : > { %v2153_v45 = vpop.f32.mrb[32].mxu1 }
 0x4b6   : > { %1813 = vst.msk [vmem:[%s3495_s5 + $0x10] sm:$0xff] %vm675_vm0, %v2153_v45  ;;  %v1549_v10 = vpop.f32.mrb[33].mxu1 }
 0x4b7   : > { %1811 = vst.msk [vmem:[%s3495_s5] sm:$0xff] %vm675_vm0, %v1549_v10  ;;  %v2154_v60 = vpop.f32.mrb[34].mxu1 }
 0x4b8   : > { %1814 = vst.msk [vmem:[%s3495_s5 + $0x18] sm:$0xff] %vm675_vm0, %v2154_v60  ;;  %v1552_v61 = vpop.f32.mrb[35].mxu1 }
 0x4b9   : > { %1812 = vst.msk [vmem:[%s3495_s5 + $0x8] sm:$0xff] %vm675_vm0, %v1552_v61 }
 0x4bd   : > { %v2157_v14 = vpop.f32.mrb[36].mxu1 }
 0x4be   : > { %1817 = vst.msk [vmem:[%s3495_s5 + $0x30] sm:$0xff] %vm675_vm0, %v2157_v14  ;;  %v1565_v43 = vpop.f32.mrb[37].mxu1 }
 0x4bf   : > { %1815 = vst.msk [vmem:[%s3495_s5 + $0x20] sm:$0xff] %vm675_vm0, %v1565_v43  ;;  %v2158_v9 = vpop.f32.mrb[38].mxu1 }
 0x4c0   : > { %1818 = vst.msk [vmem:[%s3495_s5 + $0x38] sm:$0xff] %vm675_vm0, %v2158_v9  ;;  %v1568_v23 = vpop.f32.mrb[39].mxu1 }
 0x4c1   : > { %1816 = vst.msk [vmem:[%s3495_s5 + $0x28] sm:$0xff] %vm675_vm0, %v1568_v23 }
 0x4cf   : > { %v2169_v11 = vpop.f32.mrb[64].mxu0 }
 0x4d0   : > { %1821 = vst.msk [vmem:[%s3495_s5 + $0x50] sm:$0xff] %vm675_vm0, %v2169_v11  ;;  %v1626_v36 = vpop.f32.mrb[65].mxu0 }
 0x4d1   : > { %1819 = vst.msk [vmem:[%s3495_s5 + $0x40] sm:$0xff] %vm675_vm0, %v1626_v36  ;;  %v2170_v22 = vpop.f32.mrb[66].mxu0 }
 0x4d2   : > { %1822 = vst.msk [vmem:[%s3495_s5 + $0x58] sm:$0xff] %vm675_vm0, %v2170_v22  ;;  %v1629_v7 = vpop.f32.mrb[67].mxu0 }
 0x4d3   : > { %1820 = vst.msk [vmem:[%s3495_s5 + $0x48] sm:$0xff] %vm675_vm0, %v1629_v7 }
 0x4d7   : > { %v2173_v48 = vpop.f32.mrb[68].mxu0 }
 0x4d8   : > { %1825 = vst.msk [vmem:[%s3495_s5 + $0x70] sm:$0xff] %vm675_vm0, %v2173_v48  ;;  %v1642_v46 = vpop.f32.mrb[69].mxu0 }
 0x4d9   : > { %1823 = vst.msk [vmem:[%s3495_s5 + $0x60] sm:$0xff] %vm675_vm0, %v1642_v46  ;;  %v2174_v2 = vpop.f32.mrb[70].mxu0 }
 0x4da   : > { %1826 = vst.msk [vmem:[%s3495_s5 + $0x78] sm:$0xff] %vm675_vm0, %v2174_v2  ;;  %v1645_v44 = vpop.f32.mrb[71].mxu0 }
 0x4db   : > { %1824 = vst.msk [vmem:[%s3495_s5 + $0x68] sm:$0xff] %vm675_vm0, %v1645_v44 }
 0x4ef   : > { %v2185_v12 = vpop.f32.mrb[40].mxu1 }
 0x4f0   : > { %1829 = vst.msk [vmem:[%s3495_s5 + $0x90] sm:$0xff] %vm675_vm0, %v2185_v12  ;;  %v1703_v59 = vpop.f32.mrb[41].mxu1 }
 0x4f1   : > { %1827 = vst.msk [vmem:[%s3495_s5 + $0x80] sm:$0xff] %vm675_vm0, %v1703_v59  ;;  %v2186_v51 = vpop.f32.mrb[42].mxu1 }
 0x4f2   : > { %1830 = vst.msk [vmem:[%s3495_s5 + $0x98] sm:$0xff] %vm675_vm0, %v2186_v51  ;;  %v1706_v42 = vpop.f32.mrb[43].mxu1 }
 0x4f3   : > { %1828 = vst.msk [vmem:[%s3495_s5 + $0x88] sm:$0xff] %vm675_vm0, %v1706_v42 }
 0x4f7   : > { %v2189_v32 = vpop.f32.mrb[44].mxu1 }
 0x4f8   : > { %1833 = vst.msk [vmem:[%s3495_s5 + $0xb0] sm:$0xff] %vm675_vm0, %v2189_v32  ;;  %v1719_v34 = vpop.f32.mrb[45].mxu1 }
 0x4f9   : > { %1831 = vst.msk [vmem:[%s3495_s5 + $0xa0] sm:$0xff] %vm675_vm0, %v1719_v34  ;;  %v2190_v8 = vpop.f32.mrb[46].mxu1 }
 0x4fa   : > { %1834 = vst.msk [vmem:[%s3495_s5 + $0xb8] sm:$0xff] %vm675_vm0, %v2190_v8  ;;  %v1722_v19 = vpop.f32.mrb[47].mxu1 }
 0x4fb   : > { %1832 = vst.msk [vmem:[%s3495_s5 + $0xa8] sm:$0xff] %vm675_vm0, %v1722_v19 }
 0x50f   : > { %v2201_v30 = vpop.f32.mrb[72].mxu0 }
 0x510   : > { %1837 = vst.msk [vmem:[%s3495_s5 + $0xd0] sm:$0xff] %vm675_vm0, %v2201_v30  ;;  %v1780_v18 = vpop.f32.mrb[73].mxu0 }
 0x511   : > { %1835 = vst.msk [vmem:[%s3495_s5 + $0xc0] sm:$0xff] %vm675_vm0, %v1780_v18  ;;  %v2202_v53 = vpop.f32.mrb[74].mxu0 }
 0x512   : > { %1838 = vst.msk [vmem:[%s3495_s5 + $0xd8] sm:$0xff] %vm675_vm0, %v2202_v53  ;;  %v1783_v50 = vpop.f32.mrb[75].mxu0 }
 0x513   : > { %1836 = vst.msk [vmem:[%s3495_s5 + $0xc8] sm:$0xff] %vm675_vm0, %v1783_v50 }
 0x517   : > { %v2205_v6 = vpop.f32.mrb[48].mxu1 }
 0x518   : > { %1841 = vst.msk [vmem:[%s3495_s5 + $0xf0] sm:$0xff] %vm675_vm0, %v2205_v6  ;;  %v1796_v21 = vpop.f32.mrb[49].mxu1 }
 0x519   : > { %1839 = vst.msk [vmem:[%s3495_s5 + $0xe0] sm:$0xff] %vm675_vm0, %v1796_v21  ;;  %v2206_v27 = vpop.f32.mrb[50].mxu1 }
 0x51a   : > { %1842 = vst.msk [vmem:[%s3495_s5 + $0xf8] sm:$0xff] %vm675_vm0, %v2206_v27  ;;  %v1799_v49 = vpop.f32.mrb[51].mxu1 }
 0x51b   : > { %1840 = vst.msk [vmem:[%s3495_s5 + $0xe8] sm:$0xff] %vm675_vm0, %v1799_v49 }
 0x51c   : > { %2494 = shalt.err (!%p2491_p2)
}
 0x51d   : > { %s2495_s17 = scalar_lea.hbm %s3560_s7, 4096  ;;  %s2499_s24 = scalar_lea.hbm %s3614_s2, 8192 }
 0x51e   : > { %p2496_p4 = scmp.ne.s32.totalorder %s3560_s7, %s2495_s17  ;;  %p2500_p9 = scmp.lt.u32.totalorder %s3560_s7, %s3614_s2 }
 0x51f   : > { %p2501_p1 = scmp.lt.u32.totalorder %s2499_s24, %s2495_s17  ;;  %p2503_p6 = scmp.lt.u32.totalorder %s2495_s17, %s3560_s7 }
 0x520   : > { %p2497_p5 = pnand %p2496_p4, %p3623_p11 }
 0x521   : > { %p2502_p3 = por %p2501_p1, %p2500_p9 }
 0x522   : > { %p2498_p7 = pneg %p2497_p5 }
 0x523   : > { %p2504_p12 = por %p2503_p6, %p2502_p3 }
 0x525   : > { %p2505_p13 = pnand %p2504_p12, %p2498_p7 }
 0x527   : > { %2508 = shalt.err (!%p2505_p13)
}
 0x528   : > { %s2555_s29 = smov 128   ;;  %s2556_s6 = smov 8  }
 0x529   : > { %2233 = dma.vmem_to_hbm [thread:$0]  (%p3623_p11), %s3562_s30, 4096, %s3560_s7, %s1844_s13, %s2555_s29, %s2555_s29, %s2556_s6  }
 0x52a PF: > { %s1873_s5 = sand.u32 1, %s2535_s9   ;;  %p3624_p8 = scmp.ne.s32.totalorder %s3619_s22, 0 }
 0x52b   : > { %p3625_p10 = scmp.ge.s32.totalorder %s2547_s12, 2  ;;  %s1874_s28 = scalar_lea.sflag [#allocation4], %s1873_s5 }
 0x52d   : > { %p2240_p0 = pnand %p3625_p10, %p3624_p8 }
 0x52f   : > { %2530 = dma.done.wait (!%p2240_p0), %s1874_s28, 4096  }
 0x530   : > { %2532 = vsyncadd (!%p2240_p0), %s1874_s28, 4294963200  ;;  %p15_p2 = scmp.ge.s32.totalorder %s2597_s15, 4   ;;  %s3626_s9 = smov %s2539_s10 }
 0x531   : > { %s3627_s10 = smov %s2543_s11  ;;  %s3628_s11 = smov %s2609_s18 }
 0x532   : > { %s3629_s12 = smov %s2597_s15  ;;  %17 = sbr.rel (!%p15_p2) target bundleno = 5 (0x5), region = 73 }
 0x539   :  { %1879 = vsyncpa [#allocation3], 1 }
 0x53a   :  { %1881 = vsyncpa [#allocation3 + $0x1], 1 }
 0x53b   :  { %1882 = vsyncpa [#allocation4], 1 }
 0x53c   :  { %1884 = vsyncpa [#allocation4 + $0x1], 1 }

</bundles_post_ra>
